<compile_context>
chip_gen: v7x
topology: tpu7x:2x2x1
jax: 0.10.0
libtpu: 0.0.40
codegen_flags: <defaults>
</compile_context>

<pallas_src>
import jax
import jax.numpy as jnp
from jax import lax
from jax.experimental import pallas as pl
from jax.experimental.pallas import tpu as pltpu


def _round_up(v, m):
    return (v + m - 1) // m * m


def _self_attn_kernel(x_ref, xt_ref, wqt_ref, bq_ref, wk_ref, bk_ref, wv_ref, bv_ref,
                      gamma_ref, out_ref, attn_ref):
    x = x_ref[0]        # (C, N)
    xt = xt_ref[0]      # (N, C)

    # 1x1 convolutions == channel matmuls with fused bias.
    qT = jnp.dot(xt, wqt_ref[...], preferred_element_type=jnp.float32) + bq_ref[...]  # (N, Cqp)
    k = jnp.dot(wk_ref[...], x, preferred_element_type=jnp.float32) + bk_ref[...]     # (Cqp, N)
    v = jnp.dot(wv_ref[...], x, preferred_element_type=jnp.float32) + bv_ref[...]     # (C,  N)

    # energy[n, m] = sum_cq q[cq, n] * k[cq, m]
    energy = jnp.dot(qT, k, preferred_element_type=jnp.float32)                        # (N, N)

    # Row softmax (numerically stable), kept entirely in VMEM.
    row_max = jnp.max(energy, axis=-1, keepdims=True)
    p = jnp.exp(energy - row_max)
    attn = p / jnp.sum(p, axis=-1, keepdims=True)
    attn_ref[0] = attn

    # out[c, n] = sum_m v[c, m] * attn[n, m]   (== V @ attention^T; contract last dims)
    out = lax.dot_general(v, attn, (((1,), (1,)), ((), ())),
                          preferred_element_type=jnp.float32)

    # Residual with learned gamma.
    out_ref[0] = gamma_ref[...] * out + x


def self_attn_pallas(x_nchw, params):
    """Forward pass of Self_Attn.  x_nchw: (B, C, W, H).  Returns (out, attention)."""
    B, C, W, H = x_nchw.shape
    N = W * H
    Cq = params["wq"].shape[0]
    Cqp = _round_up(Cq, 8)  # pad q/k channel dim to a sublane multiple (exact: zero rows)

    xf = x_nchw.reshape(B, C, N).astype(jnp.float32)        # (B, C, N)
    xt = jnp.transpose(xf, (0, 2, 1))                        # (B, N, C)

    def pad_qk(w, b):
        w = w.astype(jnp.float32)
        b = b.astype(jnp.float32)
        if Cqp != Cq:
            w = jnp.pad(w, ((0, Cqp - Cq), (0, 0)))
            b = jnp.pad(b, ((0, Cqp - Cq),))
        return w, b

    wq, bq = pad_qk(params["wq"], params["bq"])
    wk, bk = pad_qk(params["wk"], params["bk"])
    wqt = wq.T                                               # (C, Cqp)
    bq_row = bq.reshape(1, Cqp)
    bk_col = bk.reshape(Cqp, 1)
    wv = params["wv"].astype(jnp.float32)                    # (C, C)
    bv_col = params["bv"].astype(jnp.float32).reshape(C, 1)
    gamma = jnp.asarray(params["gamma"], jnp.float32).reshape(1, 1)

    out, attn = pl.pallas_call(
        _self_attn_kernel,
        out_shape=(
            jax.ShapeDtypeStruct((B, C, N), jnp.float32),
            jax.ShapeDtypeStruct((B, N, N), jnp.float32),
        ),
        grid_spec=pltpu.PrefetchScalarGridSpec(
            num_scalar_prefetch=0,
            grid=(B,),
            in_specs=[
                pl.BlockSpec((1, C, N), lambda b: (b, 0, 0)),   # x   (per-batch slab)
                pl.BlockSpec((1, N, C), lambda b: (b, 0, 0)),   # x^T (per-batch slab)
                pl.BlockSpec((C, Cqp), lambda b: (0, 0)),       # Wq^T
                pl.BlockSpec((1, Cqp), lambda b: (0, 0)),       # bq
                pl.BlockSpec((Cqp, C), lambda b: (0, 0)),       # Wk
                pl.BlockSpec((Cqp, 1), lambda b: (0, 0)),       # bk
                pl.BlockSpec((C, C), lambda b: (0, 0)),         # Wv
                pl.BlockSpec((C, 1), lambda b: (0, 0)),         # bv
                pl.BlockSpec((1, 1), lambda b: (0, 0)),         # gamma
            ],
            out_specs=(
                pl.BlockSpec((1, C, N), lambda b: (b, 0, 0)),   # out (pre-reshape)
                pl.BlockSpec((1, N, N), lambda b: (b, 0, 0)),   # attention
            ),
        ),
        compiler_params=pltpu.CompilerParams(
            dimension_semantics=("parallel",)),
    )(xf, xt, wqt, bq_row, wk, bk_col, wv, bv_col, gamma)

    return out.reshape(B, C, W, H), attn


def _reference(x, p):
    """Pure-JAX reference matching the PyTorch module semantics."""
    B, C, W, H = x.shape
    N = W * H
    xf = x.reshape(B, C, N)
    hi = lax.Precision.HIGHEST
    q = jnp.einsum("qc,bcn->bqn", p["wq"], xf, precision=hi) + p["bq"][None, :, None]
    k = jnp.einsum("qc,bcn->bqn", p["wk"], xf, precision=hi) + p["bk"][None, :, None]
    v = jnp.einsum("oc,bcn->bon", p["wv"], xf, precision=hi) + p["bv"][None, :, None]
    energy = jnp.einsum("bqn,bqm->bnm", q, k, precision=hi)
    attn = jax.nn.softmax(energy, axis=-1)
    out = jnp.einsum("bom,bnm->bon", v, attn, precision=hi)
    out = p["gamma"] * out + xf
    return out.reshape(B, C, W, H), attn


if __name__ == "__main__":
    key = jax.random.PRNGKey(0)
    kx, kwq, kbq, kwk, kbk, kwv, kbv = jax.random.split(key, 7)

    B, C, W, H = 2, 32, 16, 16          # in_dim = 32 -> query/key channels = 4
    Cq = C // 8

    x = jax.random.normal(kx, (B, C, W, H), jnp.float32)
    params = {
        "wq": 0.1 * jax.random.normal(kwq, (Cq, C), jnp.float32),  # Conv2d 1x1 weight (Cq, C, 1, 1) squeezed
        "bq": 0.1 * jax.random.normal(kbq, (Cq,), jnp.float32),
        "wk": 0.1 * jax.random.normal(kwk, (Cq, C), jnp.float32),
        "bk": 0.1 * jax.random.normal(kbk, (Cq,), jnp.float32),
        "wv": 0.1 * jax.random.normal(kwv, (C, C), jnp.float32),
        "bv": 0.1 * jax.random.normal(kbv, (C,), jnp.float32),
        # PyTorch inits gamma to 0; use a nonzero value so the attention path actually
        # contributes to the output check (semantics are identical for any gamma value).
        "gamma": jnp.float32(0.8),
    }

    fwd = jax.jit(self_attn_pallas)
    out, attn = fwd(x, params)
    out = jax.block_until_ready(out)
    attn = jax.block_until_ready(attn)

    out_ref, attn_ref = _reference(x, params)

    assert out.shape == (B, C, W, H), out.shape
    assert attn.shape == (B, W * H, W * H), attn.shape
    assert bool(jnp.all(jnp.isfinite(out))) and bool(jnp.all(jnp.isfinite(attn)))
    # Attention rows are a softmax -> each row sums to 1.
    assert bool(jnp.allclose(jnp.sum(attn, axis=-1), 1.0, atol=1e-3))
    # Match the pure-JAX f32 reference (tolerance loose enough for MXU f32-pass differences).
    assert bool(jnp.allclose(attn, attn_ref, rtol=1e-2, atol=1e-3)), \
        float(jnp.max(jnp.abs(attn - attn_ref)))
    assert bool(jnp.allclose(out, out_ref, rtol=1e-2, atol=2e-2)), \
        float(jnp.max(jnp.abs(out - out_ref)))

    print("KERNEL_OK")
</pallas_src>

<mosaic_0001>
module attributes {stable_mosaic.version = 11 : i64} {
  func.func @_self_attn_kernel(%arg0: i32, %arg1: memref<1x32x256xf32, #tpu.memory_space<vmem>>, %arg2: memref<1x256x32xf32, #tpu.memory_space<vmem>>, %arg3: memref<32x8xf32, #tpu.memory_space<vmem>>, %arg4: memref<1x8xf32, #tpu.memory_space<vmem>>, %arg5: memref<8x32xf32, #tpu.memory_space<vmem>>, %arg6: memref<8x1xf32, #tpu.memory_space<vmem>>, %arg7: memref<32x32xf32, #tpu.memory_space<vmem>>, %arg8: memref<32x1xf32, #tpu.memory_space<vmem>>, %arg9: memref<1x1xf32, #tpu.memory_space<vmem>>, %arg10: memref<1x32x256xf32, #tpu.memory_space<vmem>>, %arg11: memref<1x256x256xf32, #tpu.memory_space<vmem>>) attributes {dimension_semantics = [#tpu.dimension_semantics<parallel>], iteration_bounds = array<i64: 2>, scalar_prefetch = 0 : i64, scratch_operands = 0 : i64, tpu.core_type = #tpu.core_type<tc>, window_params = [{transform_indices = @transform_0, window_bounds = array<i64: 1, 32, 256>}, {transform_indices = @transform_1, window_bounds = array<i64: 1, 256, 32>}, {pipeline_mode = #tpu.pipeline_mode<synchronous>, transform_indices = @transform_2, window_bounds = array<i64: 32, 8>}, {pipeline_mode = #tpu.pipeline_mode<synchronous>, transform_indices = @transform_3, window_bounds = array<i64: 1, 8>}, {pipeline_mode = #tpu.pipeline_mode<synchronous>, transform_indices = @transform_4, window_bounds = array<i64: 8, 32>}, {pipeline_mode = #tpu.pipeline_mode<synchronous>, transform_indices = @transform_5, window_bounds = array<i64: 8, 1>}, {pipeline_mode = #tpu.pipeline_mode<synchronous>, transform_indices = @transform_6, window_bounds = array<i64: 32, 32>}, {pipeline_mode = #tpu.pipeline_mode<synchronous>, transform_indices = @transform_7, window_bounds = array<i64: 32, 1>}, {pipeline_mode = #tpu.pipeline_mode<synchronous>, transform_indices = @transform_8, window_bounds = array<i64: 1, 1>}, {transform_indices = @transform_9, window_bounds = array<i64: 1, 32, 256>}, {transform_indices = @transform_10, window_bounds = array<i64: 1, 256, 256>}]} {
    %c0 = arith.constant 0 : index
    %c0_0 = arith.constant 0 : index
    %c0_1 = arith.constant 0 : index
    %0 = vector.load %arg1[%c0, %c0_0, %c0_1] : memref<1x32x256xf32, #tpu.memory_space<vmem>>, vector<1x32x256xf32>
    %1 = vector.shape_cast %0 : vector<1x32x256xf32> to vector<32x256xf32>
    %c0_2 = arith.constant 0 : index
    %c0_3 = arith.constant 0 : index
    %c0_4 = arith.constant 0 : index
    %2 = vector.load %arg2[%c0_2, %c0_3, %c0_4] : memref<1x256x32xf32, #tpu.memory_space<vmem>>, vector<1x256x32xf32>
    %3 = vector.shape_cast %2 : vector<1x256x32xf32> to vector<256x32xf32>
    %c0_5 = arith.constant 0 : index
    %c0_6 = arith.constant 0 : index
    %4 = vector.load %arg3[%c0_5, %c0_6] : memref<32x8xf32, #tpu.memory_space<vmem>>, vector<32x8xf32>
    %cst = arith.constant dense<0.000000e+00> : vector<256x8xf32>
    %5 = tpu.matmul %3, %4, %cst {dimension_numbers = #tpu.dot_dimension_numbers<[1], [0], [0], [1], [0, 0, 1, 1], [], []>} : vector<256x32xf32>, vector<32x8xf32>, vector<256x8xf32> -> vector<256x8xf32>
    %c0_7 = arith.constant 0 : index
    %c0_8 = arith.constant 0 : index
    %6 = vector.load %arg4[%c0_7, %c0_8] : memref<1x8xf32, #tpu.memory_space<vmem>>, vector<1x8xf32>
    %7 = vector.broadcast %6 : vector<1x8xf32> to vector<256x8xf32>
    %8 = arith.addf %5, %7 : vector<256x8xf32>
    %c0_9 = arith.constant 0 : index
    %c0_10 = arith.constant 0 : index
    %9 = vector.load %arg5[%c0_9, %c0_10] : memref<8x32xf32, #tpu.memory_space<vmem>>, vector<8x32xf32>
    %cst_11 = arith.constant dense<0.000000e+00> : vector<8x256xf32>
    %10 = tpu.matmul %9, %1, %cst_11 {dimension_numbers = #tpu.dot_dimension_numbers<[1], [0], [0], [1], [0, 0, 1, 1], [], []>} : vector<8x32xf32>, vector<32x256xf32>, vector<8x256xf32> -> vector<8x256xf32>
    %c0_12 = arith.constant 0 : index
    %c0_13 = arith.constant 0 : index
    %11 = vector.load %arg6[%c0_12, %c0_13] : memref<8x1xf32, #tpu.memory_space<vmem>>, vector<8x1xf32>
    %12 = vector.broadcast %11 : vector<8x1xf32> to vector<8x256xf32>
    %13 = arith.addf %10, %12 : vector<8x256xf32>
    %c0_14 = arith.constant 0 : index
    %c0_15 = arith.constant 0 : index
    %14 = vector.load %arg7[%c0_14, %c0_15] : memref<32x32xf32, #tpu.memory_space<vmem>>, vector<32x32xf32>
    %cst_16 = arith.constant dense<0.000000e+00> : vector<32x256xf32>
    %15 = tpu.matmul %14, %1, %cst_16 {dimension_numbers = #tpu.dot_dimension_numbers<[1], [0], [0], [1], [0, 0, 1, 1], [], []>} : vector<32x32xf32>, vector<32x256xf32>, vector<32x256xf32> -> vector<32x256xf32>
    %c0_17 = arith.constant 0 : index
    %c0_18 = arith.constant 0 : index
    %16 = vector.load %arg8[%c0_17, %c0_18] : memref<32x1xf32, #tpu.memory_space<vmem>>, vector<32x1xf32>
    %17 = vector.broadcast %16 : vector<32x1xf32> to vector<32x256xf32>
    %18 = arith.addf %15, %17 : vector<32x256xf32>
    %cst_19 = arith.constant dense<0.000000e+00> : vector<256x256xf32>
    %19 = tpu.matmul %8, %13, %cst_19 {dimension_numbers = #tpu.dot_dimension_numbers<[1], [0], [0], [1], [0, 0, 1, 1], [], []>} : vector<256x8xf32>, vector<8x256xf32>, vector<256x256xf32> -> vector<256x256xf32>
    %cst_20 = arith.constant dense<0xFF800000> : vector<256xf32>
    %20 = vector.multi_reduction <maximumf>, %19, %cst_20 [1] : vector<256x256xf32> to vector<256xf32>
    %21 = vector.shape_cast %20 : vector<256xf32> to vector<256x1xf32>
    %22 = vector.broadcast %21 : vector<256x1xf32> to vector<256x256xf32>
    %23 = arith.subf %19, %22 : vector<256x256xf32>
    %24 = math.exp %23 : vector<256x256xf32>
    %cst_21 = arith.constant dense<0.000000e+00> : vector<256xf32>
    %25 = vector.multi_reduction <add>, %24, %cst_21 [1] : vector<256x256xf32> to vector<256xf32>
    %26 = vector.shape_cast %25 : vector<256xf32> to vector<256x1xf32>
    %27 = vector.broadcast %26 : vector<256x1xf32> to vector<256x256xf32>
    %28 = arith.divf %24, %27 : vector<256x256xf32>
    %c0_22 = arith.constant 0 : index
    %c0_23 = arith.constant 0 : index
    %c0_24 = arith.constant 0 : index
    %29 = vector.load %arg11[%c0_22, %c0_23, %c0_24] : memref<1x256x256xf32, #tpu.memory_space<vmem>>, vector<1x256x256xf32>
    %30 = vector.shape_cast %29 : vector<1x256x256xf32> to vector<256x256xf32>
    %31 = vector.shape_cast %28 : vector<256x256xf32> to vector<1x256x256xf32>
    tpu.vector_store %arg11[%c0_22, %c0_23, %c0_24], %31 {strides = array<i32>} : memref<1x256x256xf32, #tpu.memory_space<vmem>>, vector<1x256x256xf32>,
    %cst_25 = arith.constant dense<0.000000e+00> : vector<32x256xf32>
    %32 = tpu.matmul %18, %28, %cst_25 {dimension_numbers = #tpu.dot_dimension_numbers<[1], [1], [0], [0], [0, 0, 1, 0], [], []>} : vector<32x256xf32>, vector<256x256xf32>, vector<32x256xf32> -> vector<32x256xf32>
    %c0_26 = arith.constant 0 : index
    %c0_27 = arith.constant 0 : index
    %33 = vector.load %arg9[%c0_26, %c0_27] : memref<1x1xf32, #tpu.memory_space<vmem>>, vector<1x1xf32>
    %34 = vector.broadcast %33 : vector<1x1xf32> to vector<32x256xf32>
    %35 = arith.mulf %34, %32 : vector<32x256xf32>
    %36 = arith.addf %35, %1 : vector<32x256xf32>
    %c0_28 = arith.constant 0 : index
    %c0_29 = arith.constant 0 : index
    %c0_30 = arith.constant 0 : index
    %37 = vector.load %arg10[%c0_28, %c0_29, %c0_30] : memref<1x32x256xf32, #tpu.memory_space<vmem>>, vector<1x32x256xf32>
    %38 = vector.shape_cast %37 : vector<1x32x256xf32> to vector<32x256xf32>
    %39 = vector.shape_cast %36 : vector<32x256xf32> to vector<1x32x256xf32>
    tpu.vector_store %arg10[%c0_28, %c0_29, %c0_30], %39 {strides = array<i32>} : memref<1x32x256xf32, #tpu.memory_space<vmem>>, vector<1x32x256xf32>,
    return
  }
  func.func @transform_0(%arg0: i32) -> (i32, i32, i32) {
    %c0_i32 = arith.constant 0 : i32
    %c0_i32_0 = arith.constant 0 : i32
    %c0_i32_1 = arith.constant 0 : i32
    return %arg0, %c0_i32, %c0_i32_0 : i32, i32, i32
  }
  func.func @transform_1(%arg0: i32) -> (i32, i32, i32) {
    %c0_i32 = arith.constant 0 : i32
    %c0_i32_0 = arith.constant 0 : i32
    %c0_i32_1 = arith.constant 0 : i32
    return %arg0, %c0_i32, %c0_i32_0 : i32, i32, i32
  }
  func.func @transform_2(%arg0: i32) -> (i32, i32) {
    %c0_i32 = arith.constant 0 : i32
    %c0_i32_0 = arith.constant 0 : i32
    %c0_i32_1 = arith.constant 0 : i32
    return %c0_i32, %c0_i32_0 : i32, i32
  }
  func.func @transform_3(%arg0: i32) -> (i32, i32) {
    %c0_i32 = arith.constant 0 : i32
    %c0_i32_0 = arith.constant 0 : i32
    %c0_i32_1 = arith.constant 0 : i32
    return %c0_i32, %c0_i32_0 : i32, i32
  }
  func.func @transform_4(%arg0: i32) -> (i32, i32) {
    %c0_i32 = arith.constant 0 : i32
    %c0_i32_0 = arith.constant 0 : i32
    %c0_i32_1 = arith.constant 0 : i32
    return %c0_i32, %c0_i32_0 : i32, i32
  }
  func.func @transform_5(%arg0: i32) -> (i32, i32) {
    %c0_i32 = arith.constant 0 : i32
    %c0_i32_0 = arith.constant 0 : i32
    %c0_i32_1 = arith.constant 0 : i32
    return %c0_i32, %c0_i32_0 : i32, i32
  }
  func.func @transform_6(%arg0: i32) -> (i32, i32) {
    %c0_i32 = arith.constant 0 : i32
    %c0_i32_0 = arith.constant 0 : i32
    %c0_i32_1 = arith.constant 0 : i32
    return %c0_i32, %c0_i32_0 : i32, i32
  }
  func.func @transform_7(%arg0: i32) -> (i32, i32) {
    %c0_i32 = arith.constant 0 : i32
    %c0_i32_0 = arith.constant 0 : i32
    %c0_i32_1 = arith.constant 0 : i32
    return %c0_i32, %c0_i32_0 : i32, i32
  }
  func.func @transform_8(%arg0: i32) -> (i32, i32) {
    %c0_i32 = arith.constant 0 : i32
    %c0_i32_0 = arith.constant 0 : i32
    %c0_i32_1 = arith.constant 0 : i32
    return %c0_i32, %c0_i32_0 : i32, i32
  }
  func.func @transform_9(%arg0: i32) -> (i32, i32, i32) {
    %c0_i32 = arith.constant 0 : i32
    %c0_i32_0 = arith.constant 0 : i32
    %c0_i32_1 = arith.constant 0 : i32
    return %arg0, %c0_i32, %c0_i32_0 : i32, i32, i32
  }
  func.func @transform_10(%arg0: i32) -> (i32, i32, i32) {
    %c0_i32 = arith.constant 0 : i32
    %c0_i32_0 = arith.constant 0 : i32
    %c0_i32_1 = arith.constant 0 : i32
    return %arg0, %c0_i32, %c0_i32_0 : i32, i32, i32
  }
}

</mosaic_0001>

<bundles_post_ra>
// kernel: self_attn_pallas.1
= control target key start
LH: loop header
LB: loop body
LE: loop exit
PB: predicated region body
PF: predicated region fallthrough
CT: control target
= control target key end

     0   :  { %s3757_s0 = inlined_call_operand.vmem [shape: f32[2,32,256], index: 0, kind: input, shape index: {}]   ;;  %s3758_s1 = inlined_call_operand.vmem [shape: f32[2,256,32], index: 1, kind: input, shape index: {}]   ;;  %s3759_s2 = inlined_call_operand.vmem [shape: f32[32,8], index: 2, kind: input, shape index: {}]   ;;  %s3760_s3 = inlined_call_operand.vmem [shape: f32[1,8], index: 3, kind: input, shape index: {}]   ;;  %s3761_s4 = inlined_call_operand.vmem [shape: f32[8,32], index: 4, kind: input, shape index: {}]   ;;  %s3762_s5 = inlined_call_operand.vmem [shape: f32[8,1], index: 5, kind: input, shape index: {}]   ;;  %s3763_s6 = inlined_call_operand.vmem [shape: f32[32,32], index: 6, kind: input, shape index: {}]   ;;  %s3764_s7 = inlined_call_operand.vmem [shape: f32[32,1], index: 7, kind: input, shape index: {}]   ;;  %s3765_s8 = inlined_call_operand.<no memory space> [shape: f32[1,1], index: 8, kind: input, shape index: {}]   ;;  %s3766_s9 = inlined_call_operand.vmem [shape: f32[2,32,256], index: 9, kind: output, shape index: {0}]   ;;  %s3767_s10 = inlined_call_operand.hbm [shape: f32[2,256,256], index: 10, kind: output, shape index: {1}]  }
   0x1   :  { %v16_v0 = vstv %s3765_s8 }
   0x2   :  { %17 = vst [vmem:[#allocation2] sm:$0x1] %v16_v0 }
   0x3   :  { %18 = vsyncpa [#allocation4], 0 }
   0x4   :  { %20 = vsyncpa [#allocation4 + $0x1], 0  ;;  %s2761_s15 = smov 0   ;;  %s2763_s16 = smov 0  }
   0x5   :  { %s2765_s17 = smov 0   ;;  %s2767_s18 = smov 0  }
   0x6 LB: > { %s2782_s8 = sadd.s32 4294967295, %s2696_s18   ;;  %s2118_s19 = sadd.s32 4294967294, %s2696_s18   ;;  %s2696_s18 = sphi %s2767_s18, %s3876_s18   ;;  %s2692_s17 = sphi %s2765_s17, %s3875_s17   ;;  %s2688_s16 = sphi %s2763_s16, %s3874_s16   ;;  %s2684_s15 = sphi %s2761_s15, %s3873_s15  }
   0x7   : > { %s2786_s20 = sadd.s32 1, %s2696_s18   ;;  %s258_s21 = sadd.s32 1, %s2692_s17 }
   0x8   : > { %s255_s22 = ssub.s32 %s2696_s18, %s2786_s20  ;;  %p268_p0 = scmp.ne.s32.totalorder %s2692_s17, %s2688_s16 }
   0x9   : > { %p256_p1 = scmp.eq.s32.totalorder %s255_s22, 0  ;;  %p269_p2 = scmp.eq.s32.totalorder %s2782_s8, 1 }
   0xa   : > { %p274_p3 = scmp.ne.s32.totalorder %s2688_s16, %s2684_s15  ;;  %p275_p4 = scmp.eq.s32.totalorder %s2118_s19, 1 }
   0xb   : > { %s2797_s23 = scalar_select %p256_p1, %s2692_s17, %s258_s21  }
   0xc   : > { %p2799_p5 = por %p269_p2, %p268_p0  ;;  %p2803_p6 = por %p275_p4, %p274_p3 }
   0xd   : > { %p2121_p7 = scmp.ge.s32.totalorder %s2696_s18, 1  ;;  %p330_p8 = scmp.lt.s32.totalorder %s2696_s18, 3 }
   0xf   : > { %p331_p9 = pnand %p2121_p7, %p330_p8 }
  0x11   : > { %334 = sbr.rel (%p331_p9) target bundleno = 1257 (0x4e9), region = 56 }
  0x18   : > { %p378_p10 = scmp.lt.s32.totalorder %s2782_s8, 1  ;;  %v433_v1 = vld [vmem:[%s3759_s2] sm:$0xff]  ;;  %v434_v2 = vld [vmem:[%s3759_s2 + $0x8] sm:$0xff]  ;;  %v435_v3 = vld [vmem:[%s3759_s2 + $0x10] sm:$0xff]  ;;  %v2698_v6 = vmov 0.0   ;;  %v2699_v9 = vmov 0  }
  0x19   : > { %v2301_v4 = vpack.c.bf16 %v434_v2, %v433_v1  ;;  %v436_v5 = vld [vmem:[%s3759_s2 + $0x18] sm:$0xff]  ;;  %840 = vmatprep.mubr.f32.mxu1 %v2698_v6  ;;  %v767_v7 = vld [vmem:[%s3762_s5] sm:$0xff]  ;;  %2432 = vset.pattern.permute.xlu0 %v2699_v9  ;;  %vm444_vm0 = vcmask 261120   ;;  %v848_v35 = vld [vmem:[%s3763_s6 + $0x8] sm:$0xff]  ;;  %vm976_vm1 = vcmask 64512   ;;  %s2208_s11 = sshll.u32 %s2782_s8, 13 }
  0x1a   : > { %s2827_s21 = scalar_select %p378_p10, %s2782_s8, 1  ;;  %v2305_v8 = vpack.c.bf16 %v436_v5, %v435_v3  ;;  %2433 = vset.pattern.permute.xlu1 %v2699_v9  ;;  %770 = vperm.xlu0 %2432, %v767_v7   ;;  %v766_v27 = vld [vmem:[%s3761_s4] sm:$0xff]  ;;  %v849_v38 = vld [vmem:[%s3763_s6 + $0x10] sm:$0xff]  ;;  %v850_v58 = vld [vmem:[%s3763_s6 + $0x18] sm:$0xff] }
  0x1b   : > { %2302 = vmatprep.subr.bf16.mxu0 %v2301_v4  ;;  %v847_v32 = vld [vmem:[%s3763_s6] sm:$0xff]  ;;  %s2700_s8 = smov [#allocation3]  }
  0x1c   : > { %s3794_s22 = sshll.u32 %s2827_s21, 6  ;;  %s2206_s26 = sshll.u32 %s2827_s21, 8  ;;  %2304 = vmatpush3.bf16.msra.mxu0 %v2301_v4  ;;  %v2943_v63 = vld [vmem:[%s3760_s3] ss:$0 sm:$0xff] }
  0x1d   : > { %s2836_s29 = scalar_lea.vmem %s3757_s0, %s3794_s22  ;;  %s2841_s12 = scalar_lea.vmem %s3758_s1, %s2206_s26  ;;  %2306 = vmatprep.subr.bf16.mxu0 %v2305_v8 }
  0x1e   : > { %v394_v10 = vld [vmem:[%s2836_s29 + $0x8] sm:$0xff]  ;;  %v396_v11 = vld [vmem:[%s2836_s29 + $0x18] sm:$0xff]  ;;  %v393_v12 = vld [vmem:[%s2836_s29] sm:$0xff]  ;;  %s3687_s26 = scalar_lea.hbm %s3767_s10, %s2208_s11 }
  0x1f   : > { %v2309_v13 = vpack.c.bf16 %v396_v11, %v394_v10  ;;  %v395_v14 = vld [vmem:[%s2836_s29 + $0x10] sm:$0xff]  ;;  %v398_v15 = vld [vmem:[%s2836_s29 + $0x28] sm:$0xff]  ;;  %v400_v16 = vld [vmem:[%s2836_s29 + $0x38] sm:$0xff] }
  0x20   : > { %v2311_v17 = vpack.c.bf16 %v395_v14, %v393_v12  ;;  %v2313_v18 = vpack.c.bf16 %v400_v16, %v398_v15  ;;  %v397_v19 = vld [vmem:[%s2836_s29 + $0x20] sm:$0xff]  ;;  %v399_v20 = vld [vmem:[%s2836_s29 + $0x30] sm:$0xff]  ;;  %2308 = vmatpush3.bf16.msra.mxu0 %v2305_v8  ;;  %v402_v22 = vld [vmem:[%s2841_s12 + $0x8] sm:$0xff] }
  0x21   : > { %v401_v21 = vld [vmem:[%s2841_s12] sm:$0xff]  ;;  %2310 = vmatprep.subr.bf16.mxu1 %v2309_v13  ;;  %v403_v23 = vld [vmem:[%s2841_s12 + $0x10] sm:$0xff]  ;;  %v2315_v24 = vpack.c.bf16 %v399_v20, %v397_v19  ;;  %v404_v25 = vld [vmem:[%s2841_s12 + $0x18] sm:$0xff] }
  0x22   : > { %2253 = vmatprep.mubr.msk.f32.mxu0 %vm444_vm0, %v401_v21  ;;  %2312 = vmatpush1.bf16.msra.mxu1 %v2311_v17  ;;  %v405_v26 = vld [vmem:[%s2841_s12 + $0x20] sm:$0xff]  ;;  %v406_v28 = vld [vmem:[%s2841_s12 + $0x28] sm:$0xff]  ;;  %v407_v29 = vld [vmem:[%s2841_s12 + $0x30] sm:$0xff] }
  0x23   : > { %2314 = vmatprep.subr.bf16.mxu1 %v2313_v18  ;;  %2254 = vmatmul.mubr.msk.f32.vlgmr.msra.gmra.mrb[0].mxu0 %vm444_vm0, %v402_v22  ;;  %v408_v30 = vld [vmem:[%s2841_s12 + $0x38] sm:$0xff]  ;;  %v409_v31 = vld [vmem:[%s2841_s12 + $0x40] sm:$0xff]  ;;  %v410_v33 = vld [vmem:[%s2841_s12 + $0x48] sm:$0xff] }
  0x24   : > { %2256 = vmatprep.mubr.msk.f32.mxu0 %vm444_vm0, %v403_v23  ;;  %v411_v34 = vld [vmem:[%s2841_s12 + $0x50] sm:$0xff]  ;;  %v412_v36 = vld [vmem:[%s2841_s12 + $0x58] sm:$0xff]  ;;  %v413_v37 = vld [vmem:[%s2841_s12 + $0x60] sm:$0xff] }
  0x25   : > { %v414_v39 = vld [vmem:[%s2841_s12 + $0x68] sm:$0xff]  ;;  %v415_v40 = vld [vmem:[%s2841_s12 + $0x70] sm:$0xff]  ;;  %v416_v41 = vld [vmem:[%s2841_s12 + $0x78] sm:$0xff] }
  0x26   : > { %2316 = vmatpush1.bf16.msra.mxu1 %v2315_v24  ;;  %v417_v42 = vld [vmem:[%s2841_s12 + $0x80] sm:$0xff]  ;;  %v418_v43 = vld [vmem:[%s2841_s12 + $0x88] sm:$0xff]  ;;  %v419_v44 = vld [vmem:[%s2841_s12 + $0x90] sm:$0xff] }
  0x27   : > { %2257 = vmatmul.mubr.msk.f32.gmra.mrb[2].mxu0 %vm444_vm0, %v404_v25  ;;  %2318 = vmatprep.subr.bf16.mxu1 %v2309_v13  ;;  %v420_v45 = vld [vmem:[%s2841_s12 + $0x98] sm:$0xff]  ;;  %v421_v46 = vld [vmem:[%s2841_s12 + $0xa0] sm:$0xff]  ;;  %v422_v47 = vld [vmem:[%s2841_s12 + $0xa8] sm:$0xff] }
  0x28   : > { %2259 = vmatprep.mubr.msk.f32.mxu0 %vm444_vm0, %v405_v26  ;;  %v423_v48 = vld [vmem:[%s2841_s12 + $0xb0] sm:$0xff]  ;;  %v424_v49 = vld [vmem:[%s2841_s12 + $0xb8] sm:$0xff]  ;;  %v425_v50 = vld [vmem:[%s2841_s12 + $0xc0] sm:$0xff] }
  0x29   : > { %2162 = vmatmul.mubr.msk.f32.vlgmr.msra.gmra.mrb[0].mxu1 %vm444_vm0, %v766_v27  ;;  %v426_v51 = vld [vmem:[%s2841_s12 + $0xc8] sm:$0xff]  ;;  %v427_v52 = vld [vmem:[%s2841_s12 + $0xd0] sm:$0xff]  ;;  %v428_v53 = vld [vmem:[%s2841_s12 + $0xd8] sm:$0xff] }
  0x2a   : > { %2320 = vmatpush1.bf16.msra.mxu1 %v2311_v17  ;;  %951 = vmatprep.mubr.f32.mxu1 %v2698_v6  ;;  %v429_v54 = vld [vmem:[%s2841_s12 + $0xe0] sm:$0xff]  ;;  %v430_v55 = vld [vmem:[%s2841_s12 + $0xe8] sm:$0xff]  ;;  %v431_v56 = vld [vmem:[%s2841_s12 + $0xf0] sm:$0xff] }
  0x2b   : > { %2260 = vmatmul.mubr.msk.f32.gmra.mrb[4].mxu0 %vm444_vm0, %v406_v28  ;;  %2322 = vmatprep.subr.bf16.mxu1 %v2313_v18  ;;  %v432_v57 = vld [vmem:[%s2841_s12 + $0xf8] sm:$0xff]  ;;  %s375_s12 = sand.u32 1, %s2688_s16  }
  0x2c   : > { %2262 = vmatprep.mubr.msk.f32.mxu0 %vm444_vm0, %v407_v29  ;;  %s2122_s27 = sshll.u32 %s375_s12, 9 }
  0x2d   : > { %s3480_s28 = scalar_lea.vmem [#allocation3], %s2122_s27  ;;  %s3693_s27 = scalar_lea.sflag [#allocation4], %s375_s12 }
  0x2e   : > { %2324 = vmatpush1.bf16.msra.mxu1 %v2315_v24  ;;  %s2019_s13 = sshll.u32 %s3480_s28, 4  ;;  %s3689_s13 = int_to_ptr.vmem [resolvable:$true] %s2019_s13 }
  0x2f   : > { %2263 = vmatmul.mubr.msk.f32.gmra.mrb[6].mxu0 %vm444_vm0, %v408_v30  ;;  %s2634_s30 = scalar_lea.vmem %s3689_s13, 8192 }
  0x30   : > { %2265 = vmatprep.mubr.msk.f32.mxu0 %vm444_vm0, %v409_v31  ;;  %p2635_p11 = scmp.ne.s32.totalorder %s3689_s13, %s2634_s30 }
  0x31   : > { %2163 = vmatmul.mubr.msk.f32.vlgmr.msra.gmra.mrb[2].mxu1 %vm444_vm0, %v847_v32 }
  0x32   : > { %957 = vmatprep.mubr.f32.mxu1 %v2698_v6  ;;  %p2636_p12 = pnand %p2635_p11, %p2799_p5 }
  0x33   : > { %2266 = vmatmul.mubr.msk.f32.gmra.mrb[8].mxu0 %vm444_vm0, %v410_v33 }
  0x34   : > { %2268 = vmatprep.mubr.msk.f32.mxu0 %vm444_vm0, %v411_v34  ;;  %p2637_p13 = pneg %p2636_p12 }
  0x35   : > { %2164 = vmatmul.mubr.msk.f32.gmra.mrb[4].mxu1 %vm444_vm0, %v848_v35 }
  0x36   : > { %963 = vmatprep.mubr.f32.mxu1 %v2698_v6 }
  0x37   : > { %2269 = vmatmul.mubr.msk.f32.gmra.mrb[10].mxu0 %vm444_vm0, %v412_v36 }
  0x38   : > { %2271 = vmatprep.mubr.msk.f32.mxu0 %vm444_vm0, %v413_v37 }
  0x39   : > { %2165 = vmatmul.mubr.msk.f32.gmra.mrb[6].mxu1 %vm444_vm0, %v849_v38 }
  0x3a   : > { %969 = vmatprep.mubr.f32.mxu1 %v2698_v6 }
  0x3b   : > { %2272 = vmatmul.mubr.msk.f32.gmra.mrb[12].mxu0 %vm444_vm0, %v414_v39 }
  0x3c   : > { %2274 = vmatprep.mubr.msk.f32.mxu0 %vm444_vm0, %v415_v40 }
  0x3d   : > { %2166 = vmatmul.mubr.msk.f32.gmra.mrb[8].mxu1 %vm444_vm0, %v850_v58 }
  0x3e   : > { %1137 = vmatprep.mubr.f32.mxu1 %v2698_v6 }
  0x3f   : > { %2275 = vmatmul.mubr.msk.f32.gmra.mrb[14].mxu0 %vm444_vm0, %v416_v41 }
  0x40   : > { %2277 = vmatprep.mubr.msk.f32.mxu0 %vm444_vm0, %v417_v42 }
  0x43   : > { %2278 = vmatmul.mubr.msk.f32.gmra.mrb[16].mxu0 %vm444_vm0, %v418_v43 }
  0x44   : > { %2280 = vmatprep.mubr.msk.f32.mxu0 %vm444_vm0, %v419_v44 }
  0x47   : > { %2281 = vmatmul.mubr.msk.f32.gmra.mrb[18].mxu0 %vm444_vm0, %v420_v45 }
  0x48   : > { %2283 = vmatprep.mubr.msk.f32.mxu0 %vm444_vm0, %v421_v46 }
  0x4b   : > { %2284 = vmatmul.mubr.msk.f32.gmra.mrb[20].mxu0 %vm444_vm0, %v422_v47 }
  0x4c   : > { %2286 = vmatprep.mubr.msk.f32.mxu0 %vm444_vm0, %v423_v48 }
  0x4f   : > { %2287 = vmatmul.mubr.msk.f32.gmra.mrb[22].mxu0 %vm444_vm0, %v424_v49 }
  0x50   : > { %2289 = vmatprep.mubr.msk.f32.mxu0 %vm444_vm0, %v425_v50 }
  0x53   : > { %2290 = vmatmul.mubr.msk.f32.gmra.mrb[24].mxu0 %vm444_vm0, %v426_v51 }
  0x54   : > { %2292 = vmatprep.mubr.msk.f32.mxu0 %vm444_vm0, %v427_v52 }
  0x57   : > { %2293 = vmatmul.mubr.msk.f32.gmra.mrb[26].mxu0 %vm444_vm0, %v428_v53 }
  0x58   : > { %2295 = vmatprep.mubr.msk.f32.mxu0 %vm444_vm0, %v429_v54 }
  0x5b   : > { %2296 = vmatmul.mubr.msk.f32.gmra.mrb[28].mxu0 %vm444_vm0, %v430_v55 }
  0x5c   : > { %2298 = vmatprep.mubr.msk.f32.mxu0 %vm444_vm0, %v431_v56 }
  0x5f   : > { %2299 = vmatmul.mubr.msk.f32.gmra.mrb[30].mxu0 %vm444_vm0, %v432_v57 }
  0x99   : > { %v771_v62 = vpop.permute.xlu0 %770 }
  0xf6   : > { %v2255_v59 = vpop.f32.mrb[0].mxu0 }
  0xf7   : > { %v607_v60 = vpop.f32.mrb[1].mxu0  ;;  %v613_v11 = vadd.f32 %v2255_v59, %v2943_v63 }
  0xf8   : > { %v608_v4 = vadd.f32 %v2943_v63, %v607_v60 }
  0xfa   : > { %v2258_v61 = vpop.f32.mrb[2].mxu0 }
  0xfb   : > { %v617_v0 = vpop.f32.mrb[3].mxu0  ;;  %v623_v21 = vadd.f32 %v2258_v61, %v2943_v63 }
  0xfc   : > { %v842_v1 = vpop.f32.mrb[0].mxu1  ;;  %v618_v14 = vadd.f32 %v2943_v63, %v617_v0 }
  0xfd   : > { %v844_v2 = vpop.f32.mrb[1].mxu1  ;;  %v843_v7 = vadd.f32 %v842_v1, %v771_v62 }
  0xfe   : > { %v845_v3 = vadd.f32 %v844_v2, %v771_v62  ;;  %v2261_v5 = vpop.f32.mrb[4].mxu0 }
  0xff   : > { %v627_v8 = vpop.f32.mrb[5].mxu0  ;;  %v633_v27 = vadd.f32 %v2261_v5, %v2943_v63 }
 0x100   : > { %1073 = vmatprep.subr.mxu1 %v845_v3  ;;  %v628_v24 = vadd.f32 %v2943_v63, %v627_v8 }
 0x101   : > { %1074 = vmatpush1.msra.mxu1 %v843_v7 }
 0x102   : > { %2167 = vmatmul.mubr.msk.f32.vlgmr.msra.gmra.mrb[10].mxu1 %vm976_vm1, %v608_v4  ;;  %v2264_v9 = vpop.f32.mrb[6].mxu0 }
 0x103   : > { %1143 = vmatprep.mubr.f32.mxu1 %v2698_v6  ;;  %v637_v10 = vpop.f32.mrb[7].mxu0  ;;  %v643_v35 = vadd.f32 %v2264_v9, %v2943_v63 }
 0x104   : > { %v2949_v12 = vpop.f32.mrb[2].mxu1  ;;  %v638_v30 = vadd.f32 %v2943_v63, %v637_v10 }
 0x105   : > { %3797 = vst [vmem:[#allocation6_spill] sm:$0xff] %v2949_v12  ;;  %v2951_v13 = vpop.f32.mrb[3].mxu1 }
 0x106   : > { %3798 = vst [vmem:[#allocation7_spill] sm:$0xff] %v2951_v13  ;;  %2168 = vmatmul.mubr.msk.f32.gmra.mrb[12].mxu1 %vm976_vm1, %v613_v11  ;;  %v2267_v15 = vpop.f32.mrb[8].mxu0 }
 0x107   : > { %1149 = vmatprep.mubr.f32.mxu1 %v2698_v6  ;;  %v647_v16 = vpop.f32.mrb[9].mxu0  ;;  %v653_v45 = vadd.f32 %v2267_v15, %v2943_v63 }
 0x108   : > { %v2956_v17 = vpop.f32.mrb[4].mxu1  ;;  %v648_v40 = vadd.f32 %v2943_v63, %v647_v16 }
 0x109   : > { %3799 = vst [vmem:[#allocation8_spill] sm:$0xff] %v2956_v17  ;;  %v2958_v18 = vpop.f32.mrb[5].mxu1 }
 0x10a   : > { %3800 = vst [vmem:[#allocation9_spill] sm:$0xff] %v2958_v18  ;;  %2169 = vmatmul.mubr.msk.f32.gmra.mrb[14].mxu1 %vm976_vm1, %v618_v14  ;;  %v2270_v19 = vpop.f32.mrb[10].mxu0 }
 0x10b   : > { %1155 = vmatprep.mubr.f32.mxu1 %v2698_v6  ;;  %v657_v20 = vpop.f32.mrb[11].mxu0  ;;  %v663_v55 = vadd.f32 %v2270_v19, %v2943_v63 }
 0x10c   : > { %v2963_v22 = vpop.f32.mrb[6].mxu1  ;;  %v658_v50 = vadd.f32 %v2943_v63, %v657_v20 }
 0x10d   : > { %3801 = vst [vmem:[#allocation10_spill] sm:$0xff] %v2963_v22  ;;  %v2965_v23 = vpop.f32.mrb[7].mxu1 }
 0x10e   : > { %3802 = vst [vmem:[#allocation11_spill] sm:$0xff] %v2965_v23  ;;  %2170 = vmatmul.mubr.msk.f32.gmra.mrb[16].mxu1 %vm976_vm1, %v623_v21  ;;  %v2273_v25 = vpop.f32.mrb[12].mxu0 }
 0x10f   : > { %1161 = vmatprep.mubr.f32.mxu1 %v2698_v6  ;;  %v667_v26 = vpop.f32.mrb[13].mxu0  ;;  %v673_v2 = vadd.f32 %v2273_v25, %v2943_v63 }
 0x110   : > { %v668_v60 = vadd.f32 %v2943_v63, %v667_v26 }
 0x112   : > { %2171 = vmatmul.mubr.msk.f32.gmra.mrb[18].mxu1 %vm976_vm1, %v628_v24  ;;  %v2276_v28 = vpop.f32.mrb[14].mxu0 }
 0x113   : > { %1167 = vmatprep.mubr.f32.mxu1 %v2698_v6  ;;  %v677_v29 = vpop.f32.mrb[15].mxu0  ;;  %v683_v9 = vadd.f32 %v2276_v28, %v2943_v63 }
 0x114   : > { %v678_v8 = vadd.f32 %v2943_v63, %v677_v29 }
 0x116   : > { %2172 = vmatmul.mubr.msk.f32.gmra.mrb[20].mxu1 %vm976_vm1, %v633_v27  ;;  %v2279_v31 = vpop.f32.mrb[16].mxu0 }
 0x117   : > { %1173 = vmatprep.mubr.f32.mxu1 %v2698_v6  ;;  %v693_v32 = vadd.f32 %v2279_v31, %v2943_v63  ;;  %v687_v33 = vpop.f32.mrb[17].mxu0 }
 0x118   : > { %v688_v34 = vadd.f32 %v2943_v63, %v687_v33 }
 0x11a   : > { %2173 = vmatmul.mubr.msk.f32.gmra.mrb[22].mxu1 %vm976_vm1, %v638_v30  ;;  %v2282_v36 = vpop.f32.mrb[18].mxu0 }
 0x11b   : > { %1179 = vmatprep.mubr.f32.mxu1 %v2698_v6  ;;  %v703_v37 = vadd.f32 %v2282_v36, %v2943_v63  ;;  %v697_v38 = vpop.f32.mrb[19].mxu0 }
 0x11c   : > { %v698_v39 = vadd.f32 %v2943_v63, %v697_v38 }
 0x11e   : > { %2174 = vmatmul.mubr.msk.f32.gmra.mrb[24].mxu1 %vm976_vm1, %v643_v35  ;;  %v2285_v41 = vpop.f32.mrb[20].mxu0 }
 0x11f   : > { %1185 = vmatprep.mubr.f32.mxu1 %v2698_v6  ;;  %v713_v42 = vadd.f32 %v2285_v41, %v2943_v63  ;;  %v707_v43 = vpop.f32.mrb[21].mxu0 }
 0x120   : > { %v708_v44 = vadd.f32 %v2943_v63, %v707_v43 }
 0x122   : > { %2175 = vmatmul.mubr.msk.f32.gmra.mrb[26].mxu1 %vm976_vm1, %v648_v40  ;;  %v2288_v46 = vpop.f32.mrb[22].mxu0 }
 0x123   : > { %1191 = vmatprep.mubr.f32.mxu1 %v2698_v6  ;;  %v723_v47 = vadd.f32 %v2288_v46, %v2943_v63  ;;  %v717_v48 = vpop.f32.mrb[23].mxu0 }
 0x124   : > { %v718_v49 = vadd.f32 %v2943_v63, %v717_v48 }
 0x126   : > { %2176 = vmatmul.mubr.msk.f32.gmra.mrb[28].mxu1 %vm976_vm1, %v653_v45  ;;  %v2291_v51 = vpop.f32.mrb[24].mxu0 }
 0x127   : > { %1197 = vmatprep.mubr.f32.mxu1 %v2698_v6  ;;  %v733_v52 = vadd.f32 %v2291_v51, %v2943_v63  ;;  %v727_v53 = vpop.f32.mrb[25].mxu0 }
 0x128   : > { %v728_v54 = vadd.f32 %v2943_v63, %v727_v53 }
 0x12a   : > { %2177 = vmatmul.mubr.msk.f32.gmra.mrb[30].mxu1 %vm976_vm1, %v658_v50  ;;  %v2294_v56 = vpop.f32.mrb[26].mxu0 }
 0x12b   : > { %1203 = vmatprep.mubr.f32.mxu1 %v2698_v6  ;;  %v743_v57 = vadd.f32 %v2294_v56, %v2943_v63  ;;  %v737_v58 = vpop.f32.mrb[27].mxu0 }
 0x12c   : > { %v738_v59 = vadd.f32 %v2943_v63, %v737_v58 }
 0x12e   : > { %2178 = vmatmul.mubr.msk.f32.gmra.mrb[32].mxu1 %vm976_vm1, %v663_v55  ;;  %v2297_v61 = vpop.f32.mrb[28].mxu0 }
 0x12f   : > { %1209 = vmatprep.mubr.f32.mxu1 %v2698_v6  ;;  %v753_v62 = vadd.f32 %v2297_v61, %v2943_v63  ;;  %v747_v0 = vpop.f32.mrb[29].mxu0 }
 0x130   : > { %v748_v1 = vadd.f32 %v2943_v63, %v747_v0 }
 0x132   : > { %2179 = vmatmul.mubr.msk.f32.gmra.mrb[34].mxu1 %vm976_vm1, %v668_v60  ;;  %v2300_v3 = vpop.f32.mrb[30].mxu0 }
 0x133   : > { %1215 = vmatprep.mubr.f32.mxu1 %v2698_v6  ;;  %v763_v4 = vadd.f32 %v2300_v3, %v2943_v63  ;;  %v757_v5 = vpop.f32.mrb[31].mxu0 }
 0x134   : > { %v758_v7 = vadd.f32 %v2943_v63, %v757_v5  ;;  %v3029_v63 = vpop.f32.mrb[8].mxu1 }
 0x135   : > { %3803 = vst [vmem:[#allocation12_spill] sm:$0xff] %v3029_v63  ;;  %v3031_v10 = vpop.f32.mrb[9].mxu1 }
 0x136   : > { %2180 = vmatmul.mubr.msk.f32.gmra.mrb[36].mxu1 %vm976_vm1, %v673_v2  ;;  %3804 = vst [vmem:[#allocation13_spill] sm:$0xff] %v3031_v10 }
 0x137   : > { %1221 = vmatprep.mubr.f32.mxu1 %v2698_v6 }
 0x13a   : > { %2181 = vmatmul.mubr.msk.f32.gmra.mrb[38].mxu1 %vm976_vm1, %v678_v8 }
 0x13b   : > { %1227 = vmatprep.mubr.f32.mxu1 %v2698_v6 }
 0x13e   : > { %2182 = vmatmul.mubr.msk.f32.gmra.mrb[40].mxu1 %vm976_vm1, %v683_v9 }
 0x13f   : > { %1233 = vmatprep.mubr.f32.mxu1 %v2698_v6 }
 0x142   : > { %2183 = vmatmul.mubr.msk.f32.gmra.mrb[42].mxu1 %vm976_vm1, %v688_v34 }
 0x143   : > { %1239 = vmatprep.mubr.f32.mxu1 %v2698_v6 }
 0x146   : > { %2184 = vmatmul.mubr.msk.f32.gmra.mrb[44].mxu1 %vm976_vm1, %v693_v32 }
 0x147   : > { %1245 = vmatprep.mubr.f32.mxu1 %v2698_v6 }
 0x14a   : > { %2185 = vmatmul.mubr.msk.f32.gmra.mrb[46].mxu1 %vm976_vm1, %v698_v39 }
 0x14b   : > { %1251 = vmatprep.mubr.f32.mxu1 %v2698_v6 }
 0x14e   : > { %2186 = vmatmul.mubr.msk.f32.gmra.mrb[48].mxu1 %vm976_vm1, %v703_v37 }
 0x14f   : > { %1257 = vmatprep.mubr.f32.mxu1 %v2698_v6 }
 0x152   : > { %2187 = vmatmul.mubr.msk.f32.gmra.mrb[50].mxu1 %vm976_vm1, %v708_v44 }
 0x153   : > { %1263 = vmatprep.mubr.f32.mxu1 %v2698_v6 }
 0x156   : > { %2188 = vmatmul.mubr.msk.f32.gmra.mrb[52].mxu1 %vm976_vm1, %v713_v42 }
 0x157   : > { %1269 = vmatprep.mubr.f32.mxu1 %v2698_v6 }
 0x15a   : > { %2189 = vmatmul.mubr.msk.f32.gmra.mrb[54].mxu1 %vm976_vm1, %v718_v49 }
 0x15b   : > { %1275 = vmatprep.mubr.f32.mxu1 %v2698_v6 }
 0x15e   : > { %2190 = vmatmul.mubr.msk.f32.gmra.mrb[56].mxu1 %vm976_vm1, %v723_v47 }
 0x15f   : > { %1281 = vmatprep.mubr.f32.mxu1 %v2698_v6 }
 0x162   : > { %2191 = vmatmul.mubr.msk.f32.gmra.mrb[58].mxu1 %vm976_vm1, %v728_v54 }
 0x163   : > { %1287 = vmatprep.mubr.f32.mxu1 %v2698_v6 }
 0x166   : > { %2192 = vmatmul.mubr.msk.f32.gmra.mrb[60].mxu1 %vm976_vm1, %v733_v52 }
 0x167   : > { %1293 = vmatprep.mubr.f32.mxu1 %v2698_v6 }
 0x16a   : > { %2193 = vmatmul.mubr.msk.f32.gmra.mrb[62].mxu1 %vm976_vm1, %v738_v59 }
 0x16b   : > { %1299 = vmatprep.mubr.f32.mxu1 %v2698_v6 }
 0x16e   : > { %2194 = vmatmul.mubr.msk.f32.gmra.mrb[64].mxu1 %vm976_vm1, %v743_v57 }
 0x16f   : > { %1305 = vmatprep.mubr.f32.mxu1 %v2698_v6 }
 0x172   : > { %2195 = vmatmul.mubr.msk.f32.gmra.mrb[66].mxu1 %vm976_vm1, %v748_v1 }
 0x173   : > { %1311 = vmatprep.mubr.f32.mxu1 %v2698_v6 }
 0x176   : > { %2196 = vmatmul.mubr.msk.f32.gmra.mrb[68].mxu1 %vm976_vm1, %v753_v62 }
 0x177   : > { %1317 = vmatprep.mubr.f32.mxu1 %v2698_v6 }
 0x17a   : > { %2197 = vmatmul.mubr.msk.f32.gmra.mrb[70].mxu1 %vm976_vm1, %v758_v7 }
 0x17b   : > { %1323 = vmatprep.mubr.f32.mxu1 %v2698_v6 }
 0x17e   : > { %2198 = vmatmul.mubr.msk.f32.gmra.mrb[72].mxu1 %vm976_vm1, %v763_v4 }
 0x1d5   : > { %v3056_v11 = vpop.f32.mrb[10].mxu1 }
 0x1d6   : > { %v3058_v14 = vpop.f32.mrb[11].mxu1 }
 0x1d7   : > { %v1330_v15 = vmax.f32 %v3056_v11, %v3058_v14 }
 0x1d9   : > { %1331 = vmax.xlane.f32.xlu0 %v1330_v15  ;;  %v3062_v16 = vpop.f32.mrb[12].mxu1 }
 0x1da   : > { %v3064_v19 = vpop.f32.mrb[13].mxu1 }
 0x1db   : > { %v1333_v20 = vmax.f32 %v3062_v16, %v3064_v19 }
 0x1dd   : > { %1334 = vmax.xlane.f32.xlu1 %v1333_v20  ;;  %v3068_v21 = vpop.f32.mrb[14].mxu1 }
 0x1de   : > { %v3070_v6 = vpop.f32.mrb[15].mxu1 }
 0x1df   : > { %v1336_v24 = vmax.f32 %v3068_v21, %v3070_v6 }
 0x1e1   : > { %1337 = vmax.xlane.f32.xlu1 %v1336_v24  ;;  %v3074_v25 = vpop.f32.mrb[16].mxu1 }
 0x1e2   : > { %v3076_v26 = vpop.f32.mrb[17].mxu1 }
 0x1e3   : > { %v1339_v27 = vmax.f32 %v3074_v25, %v3076_v26 }
 0x1e5   : > { %1340 = vmax.xlane.f32.xlu1 %v1339_v27  ;;  %v3080_v28 = vpop.f32.mrb[18].mxu1 }
 0x1e6   : > { %v3082_v29 = vpop.f32.mrb[19].mxu1 }
 0x1e7   : > { %v1342_v30 = vmax.f32 %v3080_v28, %v3082_v29 }
 0x1e9   : > { %1343 = vmax.xlane.f32.xlu1 %v1342_v30  ;;  %v3086_v31 = vpop.f32.mrb[20].mxu1 }
 0x1ea   : > { %v3088_v32 = vpop.f32.mrb[21].mxu1 }
 0x1eb   : > { %v1345_v33 = vmax.f32 %v3086_v31, %v3088_v32 }
 0x1ed   : > { %1346 = vmax.xlane.f32.xlu1 %v1345_v33  ;;  %v3092_v34 = vpop.f32.mrb[22].mxu1 }
 0x1ee   : > { %v3094_v35 = vpop.f32.mrb[23].mxu1 }
 0x1ef   : > { %v1348_v36 = vmax.f32 %v3092_v34, %v3094_v35 }
 0x1f1   : > { %1349 = vmax.xlane.f32.xlu1 %v1348_v36  ;;  %v3098_v37 = vpop.f32.mrb[24].mxu1 }
 0x1f2   : > { %v3100_v38 = vpop.f32.mrb[25].mxu1 }
 0x1f3   : > { %v1351_v39 = vmax.f32 %v3098_v37, %v3100_v38 }
 0x1f5   : > { %1352 = vmax.xlane.f32.xlu1 %v1351_v39  ;;  %v3104_v40 = vpop.f32.mrb[26].mxu1 }
 0x1f6   : > { %v3106_v41 = vpop.f32.mrb[27].mxu1 }
 0x1f7   : > { %v1354_v42 = vmax.f32 %v3104_v40, %v3106_v41 }
 0x1f9   : > { %1355 = vmax.xlane.f32.xlu1 %v1354_v42  ;;  %v3110_v43 = vpop.f32.mrb[28].mxu1 }
 0x1fa   : > { %v3112_v44 = vpop.f32.mrb[29].mxu1 }
 0x1fb   : > { %v1357_v45 = vmax.f32 %v3110_v43, %v3112_v44 }
 0x1fd   : > { %1358 = vmax.xlane.f32.xlu1 %v1357_v45  ;;  %v3116_v46 = vpop.f32.mrb[30].mxu1 }
 0x1fe   : > { %v3118_v47 = vpop.f32.mrb[31].mxu1 }
 0x1ff   : > { %v1360_v48 = vmax.f32 %v3116_v46, %v3118_v47 }
 0x201   : > { %1361 = vmax.xlane.f32.xlu0 %v1360_v48  ;;  %v3122_v49 = vpop.f32.mrb[32].mxu1 }
 0x202   : > { %v3124_v50 = vpop.f32.mrb[33].mxu1 }
 0x203   : > { %v1363_v51 = vmax.f32 %v3122_v49, %v3124_v50 }
 0x205   : > { %1364 = vmax.xlane.f32.xlu1 %v1363_v51  ;;  %v3128_v52 = vpop.f32.mrb[34].mxu1 }
 0x206   : > { %v3130_v53 = vpop.f32.mrb[35].mxu1 }
 0x207   : > { %v1366_v54 = vmax.f32 %v3128_v52, %v3130_v53 }
 0x209   : > { %1367 = vmax.xlane.f32.xlu0 %v1366_v54  ;;  %v3134_v55 = vpop.f32.mrb[36].mxu1 }
 0x20a   : > { %v3136_v56 = vpop.f32.mrb[37].mxu1 }
 0x20b   : > { %v1369_v57 = vmax.f32 %v3134_v55, %v3136_v56 }
 0x20d   : > { %1370 = vmax.xlane.f32.xlu1 %v1369_v57  ;;  %v3140_v58 = vpop.f32.mrb[38].mxu1 }
 0x20e   : > { %v3142_v59 = vpop.f32.mrb[39].mxu1 }
 0x20f   : > { %v1372_v60 = vmax.f32 %v3140_v58, %v3142_v59 }
 0x211   : > { %1373 = vmax.xlane.f32.xlu0 %v1372_v60  ;;  %v3146_v61 = vpop.f32.mrb[40].mxu1 }
 0x212   : > { %v3148_v62 = vpop.f32.mrb[41].mxu1 }
 0x213   : > { %v1375_v0 = vmax.f32 %v3146_v61, %v3148_v62 }
 0x215   : > { %1376 = vmax.xlane.f32.xlu1 %v1375_v0  ;;  %v3152_v1 = vpop.f32.mrb[42].mxu1 }
 0x216   : > { %v3154_v2 = vpop.f32.mrb[43].mxu1 }
 0x217   : > { %v1378_v3 = vmax.f32 %v3152_v1, %v3154_v2 }
 0x219   : > { %1379 = vmax.xlane.f32.xlu0 %v1378_v3  ;;  %v3158_v4 = vpop.f32.mrb[44].mxu1 }
 0x21a   : > { %v3160_v5 = vpop.f32.mrb[45].mxu1 }
 0x21b   : > { %v1381_v7 = vmax.f32 %v3158_v4, %v3160_v5 }
 0x21d   : > { %1382 = vmax.xlane.f32.xlu1 %v1381_v7  ;;  %v3164_v8 = vpop.f32.mrb[46].mxu1 }
 0x21e   : > { %v3166_v9 = vpop.f32.mrb[47].mxu1 }
 0x21f   : > { %3805 = vst [vmem:[#allocation14_spill] sm:$0xff] %v3166_v9  ;;  %v1384_v15 = vmax.f32 %v3164_v8, %v3166_v9 }
 0x221   : > { %1385 = vmax.xlane.f32.xlu0 %v1384_v15  ;;  %v3170_v20 = vpop.f32.mrb[48].mxu1 }
 0x222   : > { %3806 = vst [vmem:[#allocation15_spill] sm:$0xff] %v3170_v20  ;;  %v3172_v24 = vpop.f32.mrb[49].mxu1 }
 0x223   : > { %3807 = vst [vmem:[#allocation16_spill] sm:$0xff] %v3172_v24  ;;  %v1387_v27 = vmax.f32 %v3170_v20, %v3172_v24 }
 0x225   : > { %1388 = vmax.xlane.f32.xlu1 %v1387_v27  ;;  %v3176_v30 = vpop.f32.mrb[50].mxu1 }
 0x226   : > { %3808 = vst [vmem:[#allocation17_spill] sm:$0xff] %v3176_v30  ;;  %v3178_v33 = vpop.f32.mrb[51].mxu1 }
 0x227   : > { %3809 = vst [vmem:[#allocation18_spill] sm:$0xff] %v3178_v33  ;;  %v1390_v36 = vmax.f32 %v3176_v30, %v3178_v33 }
 0x229   : > { %1391 = vmax.xlane.f32.xlu0 %v1390_v36  ;;  %v3182_v39 = vpop.f32.mrb[52].mxu1 }
 0x22a   : > { %3810 = vst [vmem:[#allocation19_spill] sm:$0xff] %v3182_v39  ;;  %v3184_v42 = vpop.f32.mrb[53].mxu1 }
 0x22b   : > { %3811 = vst [vmem:[#allocation20_spill] sm:$0xff] %v3184_v42  ;;  %v1393_v45 = vmax.f32 %v3182_v39, %v3184_v42 }
 0x22d   : > { %1394 = vmax.xlane.f32.xlu1 %v1393_v45  ;;  %v3188_v48 = vpop.f32.mrb[54].mxu1 }
 0x22e   : > { %3812 = vst [vmem:[#allocation21_spill] sm:$0xff] %v3188_v48  ;;  %v3190_v51 = vpop.f32.mrb[55].mxu1 }
 0x22f   : > { %3813 = vst [vmem:[#allocation22_spill] sm:$0xff] %v3190_v51  ;;  %v1396_v54 = vmax.f32 %v3188_v48, %v3190_v51 }
 0x231   : > { %1397 = vmax.xlane.f32.xlu0 %v1396_v54  ;;  %v3194_v57 = vpop.f32.mrb[56].mxu1 }
 0x232   : > { %3814 = vst [vmem:[#allocation23_spill] sm:$0xff] %v3194_v57  ;;  %v3196_v60 = vpop.f32.mrb[57].mxu1 }
 0x233   : > { %3815 = vst [vmem:[#allocation24_spill] sm:$0xff] %v3196_v60  ;;  %v1399_v0 = vmax.f32 %v3194_v57, %v3196_v60 }
 0x235   : > { %1400 = vmax.xlane.f32.xlu1 %v1399_v0  ;;  %v3200_v3 = vpop.f32.mrb[58].mxu1 }
 0x236   : > { %v3202_v7 = vpop.f32.mrb[59].mxu1 }
 0x239   : > { %v3206_v27 = vpop.f32.mrb[60].mxu1 }
 0x23a   : > { %3816 = vst [vmem:[#allocation25_spill] sm:$0xff] %v3206_v27  ;;  %v3208_v36 = vpop.f32.mrb[61].mxu1 }
 0x23b   : > { %3817 = vst [vmem:[#allocation26_spill] sm:$0xff] %v3208_v36  ;;  %v1405_v45 = vmax.f32 %v3206_v27, %v3208_v36 }
 0x23d   : > { %1406 = vmax.xlane.f32.xlu1 %v1405_v45  ;;  %v3212_v54 = vpop.f32.mrb[62].mxu1 }
 0x23e   : > { %v3214_v63 = vpop.f32.mrb[63].mxu1 }
 0x241   : > { %v3218_v10 = vpop.f32.mrb[64].mxu1 }
 0x242   : > { %v3220_v22 = vpop.f32.mrb[65].mxu1 }
 0x245   : > { %v3224_v23 = vpop.f32.mrb[66].mxu1 }
 0x246   : > { %v3226_v17 = vpop.f32.mrb[67].mxu1 }
 0x249   : > { %v3230_v18 = vpop.f32.mrb[68].mxu1 }
 0x24a   : > { %v3232_v12 = vpop.f32.mrb[69].mxu1 }
 0x24d   : > { %v3236_v13 = vpop.f32.mrb[70].mxu1 }
 0x24e   : > { %v3238_v36 = vpop.f32.mrb[71].mxu1 }
 0x251   : > { %v3242_v27 = vpop.f32.mrb[72].mxu1 }
 0x252   : > { %v3244_v60 = vpop.f32.mrb[73].mxu1 }
 0x266   : > { %v1332_v57 = vpop.xlane.xlu0 %1331 }
 0x267   : > { %v1426_v51 = vsub.f32 %v3056_v11, %v1332_v57  ;;  %v1427_v48 = vsub.f32 %v3058_v14, %v1332_v57 }
 0x269   : > { %v1490_v0 = vmul.f32 1.442695, %v1426_v51  ;;  %v1492_v42 = vmul.f32 1.442695, %v1427_v48 }
 0x26a   : > { %v1335_v39 = vpop.xlane.xlu1 %1334 }
 0x26b   : > { %2434 = vpow2.f32 %v1490_v0  ;;  %v1428_v33 = vsub.f32 %v3062_v16, %v1335_v39  ;;  %v1429_v15 = vsub.f32 %v3064_v19, %v1335_v39 }
 0x26c   : > { %2436 = vpow2.f32 %v1492_v42 }
 0x26d   : > { %v1494_v30 = vmul.f32 1.442695, %v1428_v33  ;;  %v1496_v24 = vmul.f32 1.442695, %v1429_v15 }
 0x26e   : > { %v1338_v20 = vpop.xlane.xlu1 %1337 }
 0x26f   : > { %2438 = vpow2.f32 %v1494_v30  ;;  %v1430_v45 = vsub.f32 %v3068_v21, %v1338_v20  ;;  %v1431_v9 = vsub.f32 %v3070_v6, %v1338_v20 }
 0x270   : > { %2440 = vpow2.f32 %v1496_v24 }
 0x271   : > { %v1498_v11 = vmul.f32 1.442695, %v1430_v45  ;;  %v1500_v14 = vmul.f32 1.442695, %v1431_v9 }
 0x272   : > { %v1341_v51 = vpop.xlane.xlu1 %1340 }
 0x273   : > { %2442 = vpow2.f32 %v1498_v11  ;;  %v1432_v48 = vsub.f32 %v3074_v25, %v1341_v51  ;;  %v1433_v16 = vsub.f32 %v3076_v26, %v1341_v51 }
 0x274   : > { %2444 = vpow2.f32 %v1500_v14  ;;  %v3818_v14 = vmax.f32 %v3200_v3, %v3202_v7 }
 0x275   : > { %v3256_v19 = vpop.eup %2434  ;;  %v1502_v33 = vmul.f32 1.442695, %v1432_v48  ;;  %v1504_v39 = vmul.f32 1.442695, %v1433_v16 }
 0x276   : > { %v3258_v42 = vpop.eup %2436  ;;  %v1344_v30 = vpop.xlane.xlu1 %1343 }
 0x277   : > { %2446 = vpow2.f32 %v1502_v33  ;;  %v1434_v21 = vsub.f32 %v3080_v28, %v1344_v30  ;;  %v1435_v6 = vsub.f32 %v3082_v29, %v1344_v30  ;;  %v1618_v9 = vadd.f32 %v3258_v42, %v3256_v19 }
 0x278   : > { %2448 = vpow2.f32 %v1504_v39 }
 0x279   : > { %v3264_v25 = vpop.eup %2438  ;;  %v1506_v26 = vmul.f32 1.442695, %v1434_v21  ;;  %v1508_v20 = vmul.f32 1.442695, %v1435_v6  ;;  %1619 = vadd.xlane.f32.xlu0 %v1618_v9  ;;  %v3819_v21 = vmax.f32 %v3218_v10, %v3220_v22 }
 0x27a   : > { %v3266_v24 = vpop.eup %2440  ;;  %v1347_v57 = vpop.xlane.xlu1 %1346 }
 0x27b   : > { %2450 = vpow2.f32 %v1506_v26  ;;  %v1436_v15 = vsub.f32 %v3086_v31, %v1347_v57  ;;  %v1437_v0 = vsub.f32 %v3088_v32, %v1347_v57  ;;  %v1621_v28 = vadd.f32 %v3266_v24, %v3264_v25 }
 0x27c   : > { %2452 = vpow2.f32 %v1508_v20 }
 0x27d   : > { %v3272_v29 = vpop.eup %2442  ;;  %v1510_v45 = vmul.f32 1.442695, %v1436_v15  ;;  %v1512_v11 = vmul.f32 1.442695, %v1437_v0  ;;  %1403 = vmax.xlane.f32.xlu0 %v3818_v14  ;;  %1622 = vadd.xlane.f32.xlu1 %v1621_v28  ;;  %v3820_v0 = vmax.f32 %v3212_v54, %v3214_v63 }
 0x27e   : > { %v3277_v51 = vpop.eup %2444  ;;  %v1350_v48 = vpop.xlane.xlu1 %1349 }
 0x27f   : > { %2454 = vpow2.f32 %v1510_v45  ;;  %v1438_v31 = vsub.f32 %v3092_v34, %v1350_v48  ;;  %v1439_v32 = vsub.f32 %v3094_v35, %v1350_v48  ;;  %v1624_v16 = vadd.f32 %v3277_v51, %v3272_v29 }
 0x280   : > { %2456 = vpow2.f32 %v1512_v11 }
 0x281   : > { %v3283_v33 = vpop.eup %2446  ;;  %v1514_v39 = vmul.f32 1.442695, %v1438_v31  ;;  %v1516_v30 = vmul.f32 1.442695, %v1439_v32  ;;  %1625 = vadd.xlane.f32.xlu0 %v1624_v16  ;;  %1412 = vmax.xlane.f32.xlu1 %v3819_v21  ;;  %v3821_v32 = vmax.f32 %v3230_v18, %v3232_v12 }
 0x282   : > { %v3288_v6 = vpop.eup %2448  ;;  %v1353_v9 = vpop.xlane.xlu1 %1352 }
 0x283   : > { %2458 = vpow2.f32 %v1514_v39  ;;  %v1440_v34 = vsub.f32 %v3098_v37, %v1353_v9  ;;  %v1441_v35 = vsub.f32 %v3100_v38, %v1353_v9  ;;  %v1627_v26 = vadd.f32 %v3288_v6, %v3283_v33 }
 0x284   : > { %2460 = vpow2.f32 %v1516_v30 }
 0x285   : > { %v3294_v20 = vpop.eup %2450  ;;  %v1518_v57 = vmul.f32 1.442695, %v1440_v34  ;;  %v1520_v15 = vmul.f32 1.442695, %v1441_v35  ;;  %1409 = vmax.xlane.f32.xlu0 %v3820_v0  ;;  %1628 = vadd.xlane.f32.xlu1 %v1627_v26  ;;  %v3822_v35 = vmax.f32 %v3224_v23, %v3226_v17 }
 0x286   : > { %v3299_v28 = vpop.eup %2452  ;;  %v1356_v45 = vpop.xlane.xlu1 %1355 }
 0x287   : > { %2462 = vpow2.f32 %v1518_v57  ;;  %v1442_v37 = vsub.f32 %v3104_v40, %v1356_v45  ;;  %v1443_v38 = vsub.f32 %v3106_v41, %v1356_v45  ;;  %v1630_v11 = vadd.f32 %v3299_v28, %v3294_v20 }
 0x288   : > { %2464 = vpow2.f32 %v1520_v15 }
 0x289   : > { %v3305_v14 = vpop.eup %2454  ;;  %v1522_v48 = vmul.f32 1.442695, %v1442_v37  ;;  %v1524_v31 = vmul.f32 1.442695, %v1443_v38  ;;  %1631 = vadd.xlane.f32.xlu0 %v1630_v11  ;;  %1418 = vmax.xlane.f32.xlu1 %v3821_v32  ;;  %v3823_v38 = vmax.f32 %v3242_v27, %v3244_v60 }
 0x28a   : > { %v3310_v16 = vpop.eup %2456  ;;  %v1359_v39 = vpop.xlane.xlu1 %1358 }
 0x28b   : > { %2466 = vpow2.f32 %v1522_v48  ;;  %v1444_v40 = vsub.f32 %v3110_v43, %v1359_v39  ;;  %v1445_v41 = vsub.f32 %v3112_v44, %v1359_v39  ;;  %v1633_v30 = vadd.f32 %v3310_v16, %v3305_v14 }
 0x28c   : > { %2468 = vpow2.f32 %v1524_v31 }
 0x28d   : > { %v3316_v21 = vpop.eup %2458  ;;  %v1526_v9 = vmul.f32 1.442695, %v1444_v40  ;;  %v1528_v34 = vmul.f32 1.442695, %v1445_v41  ;;  %1415 = vmax.xlane.f32.xlu0 %v3822_v35  ;;  %1634 = vadd.xlane.f32.xlu1 %v1633_v30  ;;  %v3824_v41 = vmax.f32 %v3236_v13, %v3238_v36 }
 0x28e   : > { %v3321_v26 = vpop.eup %2460  ;;  %v1362_v57 = vpop.xlane.xlu0 %1361 }
 0x28f   : > { %2470 = vpow2.f32 %v1526_v9  ;;  %v1446_v43 = vsub.f32 %v3116_v46, %v1362_v57  ;;  %v1447_v44 = vsub.f32 %v3118_v47, %v1362_v57  ;;  %v1636_v15 = vadd.f32 %v3321_v26, %v3316_v21 }
 0x290   : > { %2472 = vpow2.f32 %v1528_v34 }
 0x291   : > { %v3327_v0 = vpop.eup %2462  ;;  %v1530_v45 = vmul.f32 1.442695, %v1446_v43  ;;  %v1532_v37 = vmul.f32 1.442695, %v1447_v44  ;;  %1637 = vadd.xlane.f32.xlu0 %v1636_v15  ;;  %1424 = vmax.xlane.f32.xlu1 %v3823_v38 }
 0x292   : > { %v3332_v11 = vpop.eup %2464  ;;  %v1365_v48 = vpop.xlane.xlu1 %1364 }
 0x293   : > { %2474 = vpow2.f32 %v1530_v45  ;;  %v1448_v46 = vsub.f32 %v3122_v49, %v1365_v48  ;;  %v1449_v47 = vsub.f32 %v3124_v50, %v1365_v48  ;;  %v1639_v31 = vadd.f32 %v3332_v11, %v3327_v0 }
 0x294   : > { %2476 = vpow2.f32 %v1532_v37 }
 0x295   : > { %v3338_v32 = vpop.eup %2466  ;;  %v1534_v39 = vmul.f32 1.442695, %v1448_v46  ;;  %v1536_v40 = vmul.f32 1.442695, %v1449_v47  ;;  %1421 = vmax.xlane.f32.xlu0 %v3824_v41  ;;  %1640 = vadd.xlane.f32.xlu1 %v1639_v31 }
 0x296   : > { %v3343_v30 = vpop.eup %2468  ;;  %v1368_v9 = vpop.xlane.xlu0 %1367 }
 0x297   : > { %2478 = vpow2.f32 %v1534_v39  ;;  %v1450_v49 = vsub.f32 %v3128_v52, %v1368_v9  ;;  %v1451_v50 = vsub.f32 %v3130_v53, %v1368_v9  ;;  %v1642_v34 = vadd.f32 %v3343_v30, %v3338_v32 }
 0x298   : > { %2480 = vpow2.f32 %v1536_v40 }
 0x299   : > { %v3349_v35 = vpop.eup %2470  ;;  %v1538_v57 = vmul.f32 1.442695, %v1450_v49  ;;  %v1540_v43 = vmul.f32 1.442695, %v1451_v50  ;;  %1643 = vadd.xlane.f32.xlu0 %v1642_v34 }
 0x29a   : > { %v3351_v44 = vpop.eup %2472  ;;  %v1371_v15 = vpop.xlane.xlu1 %1370 }
 0x29b   : > { %2482 = vpow2.f32 %v1538_v57  ;;  %v1452_v45 = vsub.f32 %v3134_v55, %v1371_v15  ;;  %v1453_v37 = vsub.f32 %v3136_v56, %v1371_v15  ;;  %v1645_v52 = vadd.f32 %v3351_v44, %v3349_v35 }
 0x29c   : > { %2484 = vpow2.f32 %v1540_v43 }
 0x29d   : > { %v3357_v53 = vpop.eup %2474  ;;  %v1542_v38 = vmul.f32 1.442695, %v1452_v45  ;;  %v1544_v48 = vmul.f32 1.442695, %v1453_v37  ;;  %1646 = vadd.xlane.f32.xlu1 %v1645_v52 }
 0x29e   : > { %v3359_v46 = vpop.eup %2476  ;;  %v1374_v47 = vpop.xlane.xlu0 %1373 }
 0x29f   : > { %2486 = vpow2.f32 %v1542_v38  ;;  %v1454_v31 = vsub.f32 %v3140_v58, %v1374_v47  ;;  %v1455_v39 = vsub.f32 %v3142_v59, %v1374_v47  ;;  %v1648_v55 = vadd.f32 %v3359_v46, %v3357_v53 }
 0x2a0   : > { %2488 = vpow2.f32 %v1544_v48 }
 0x2a1   : > { %v3365_v56 = vpop.eup %2478  ;;  %v1546_v40 = vmul.f32 1.442695, %v1454_v31  ;;  %v1548_v41 = vmul.f32 1.442695, %v1455_v39  ;;  %1649 = vadd.xlane.f32.xlu0 %v1648_v55 }
 0x2a2   : > { %v3367_v9 = vpop.eup %2480  ;;  %v1377_v49 = vpop.xlane.xlu1 %1376 }
 0x2a3   : > { %2490 = vpow2.f32 %v1546_v40  ;;  %v1456_v50 = vsub.f32 %v3146_v61, %v1377_v49  ;;  %v1457_v34 = vsub.f32 %v3148_v62, %v1377_v49  ;;  %v1651_v58 = vadd.f32 %v3367_v9, %v3365_v56 }
 0x2a4   : > { %2492 = vpow2.f32 %v1548_v41 }
 0x2a5   : > { %v3373_v59 = vpop.eup %2482  ;;  %v1550_v57 = vmul.f32 1.442695, %v1456_v50  ;;  %v1552_v43 = vmul.f32 1.442695, %v1457_v34  ;;  %1652 = vadd.xlane.f32.xlu1 %v1651_v58  ;;  %v3825_v58 = vld [vmem:[#allocation14_spill] sm:$0xff] }
 0x2a6   : > { %v3375_v15 = vpop.eup %2484  ;;  %v1380_v45 = vpop.xlane.xlu0 %1379 }
 0x2a7   : > { %2494 = vpow2.f32 %v1550_v57  ;;  %v1458_v37 = vsub.f32 %v3152_v1, %v1380_v45  ;;  %v1459_v52 = vsub.f32 %v3154_v2, %v1380_v45  ;;  %v1654_v61 = vadd.f32 %v3375_v15, %v3373_v59 }
 0x2a8   : > { %2496 = vpow2.f32 %v1552_v43 }
 0x2a9   : > { %v3381_v62 = vpop.eup %2486  ;;  %v1554_v38 = vmul.f32 1.442695, %v1458_v37  ;;  %v1556_v48 = vmul.f32 1.442695, %v1459_v52  ;;  %1655 = vadd.xlane.f32.xlu0 %v1654_v61  ;;  %v3826_v61 = vld [vmem:[#allocation15_spill] sm:$0xff] }
 0x2aa   : > { %v3383_v47 = vpop.eup %2488  ;;  %v1383_v31 = vpop.xlane.xlu1 %1382 }
 0x2ab   : > { %2498 = vpow2.f32 %v1554_v38  ;;  %v1460_v39 = vsub.f32 %v3158_v4, %v1383_v31  ;;  %v1461_v55 = vsub.f32 %v3160_v5, %v1383_v31  ;;  %v1657_v1 = vadd.f32 %v3383_v47, %v3381_v62 }
 0x2ac   : > { %2500 = vpow2.f32 %v1556_v48  ;;  %v3827_v48 = vld [vmem:[#allocation16_spill] sm:$0xff] }
 0x2ad   : > { %v3389_v2 = vpop.eup %2490  ;;  %v1558_v40 = vmul.f32 1.442695, %v1460_v39  ;;  %v1560_v41 = vmul.f32 1.442695, %v1461_v55  ;;  %1658 = vadd.xlane.f32.xlu1 %v1657_v1 }
 0x2ae   : > { %v3391_v49 = vpop.eup %2492  ;;  %v1386_v50 = vpop.xlane.xlu0 %1385 }
 0x2af   : > { %2502 = vpow2.f32 %v1558_v40  ;;  %v1462_v34 = vsub.f32 %v3164_v8, %v1386_v50  ;;  %v1463_v57 = vsub.f32 %v3825_v58, %v1386_v50  ;;  %v1660_v4 = vadd.f32 %v3391_v49, %v3389_v2  ;;  %v3830_v50 = vld [vmem:[#allocation17_spill] sm:$0xff]  ;;  %v3831_v58 = vld [vmem:[#allocation18_spill] sm:$0xff] }
 0x2b0   : > { %2504 = vpow2.f32 %v1560_v41 }
 0x2b1   : > { %v3397_v5 = vpop.eup %2494  ;;  %v1562_v43 = vmul.f32 1.442695, %v1462_v34  ;;  %v1564_v45 = vmul.f32 1.442695, %v1463_v57  ;;  %1661 = vadd.xlane.f32.xlu0 %v1660_v4 }
 0x2b2   : > { %v3399_v37 = vpop.eup %2496  ;;  %v1389_v52 = vpop.xlane.xlu1 %1388 }
 0x2b3   : > { %2506 = vpow2.f32 %v1562_v43  ;;  %v1464_v38 = vsub.f32 %v3826_v61, %v1389_v52  ;;  %v1465_v31 = vsub.f32 %v3827_v48, %v1389_v52  ;;  %v1663_v8 = vadd.f32 %v3399_v37, %v3397_v5  ;;  %v3834_v48 = vld [vmem:[#allocation19_spill] sm:$0xff] }
 0x2b4   : > { %2508 = vpow2.f32 %v1564_v45 }
 0x2b5   : > { %v3405_v39 = vpop.eup %2498  ;;  %v1566_v55 = vmul.f32 1.442695, %v1464_v38  ;;  %v1568_v1 = vmul.f32 1.442695, %v1465_v31  ;;  %1664 = vadd.xlane.f32.xlu1 %v1663_v8  ;;  %v3835_v8 = vld [vmem:[#allocation20_spill] sm:$0xff] }
 0x2b6   : > { %3828 = vst [vmem:[#allocation14_spill] sm:$0xff] %v3405_v39  ;;  %v3407_v40 = vpop.eup %2500  ;;  %v1392_v41 = vpop.xlane.xlu0 %1391 }
 0x2b7   : > { %3829 = vst [vmem:[#allocation15_spill] sm:$0xff] %v3407_v40  ;;  %2510 = vpow2.f32 %v1566_v55  ;;  %v1466_v34 = vsub.f32 %v3830_v50, %v1392_v41  ;;  %v1467_v57 = vsub.f32 %v3831_v58, %v1392_v41  ;;  %v1666_v4 = vadd.f32 %v3407_v40, %v3405_v39 }
 0x2b8   : > { %2512 = vpow2.f32 %v1568_v1 }
 0x2b9   : > { %v3413_v43 = vpop.eup %2502  ;;  %v1570_v45 = vmul.f32 1.442695, %v1466_v34  ;;  %v1572_v52 = vmul.f32 1.442695, %v1467_v57  ;;  %1667 = vadd.xlane.f32.xlu0 %v1666_v4  ;;  %v3836_v4 = vld [vmem:[#allocation21_spill] sm:$0xff] }
 0x2ba   : > { %3832 = vst [vmem:[#allocation16_spill] sm:$0xff] %v3413_v43  ;;  %v3415_v61 = vpop.eup %2504  ;;  %v1395_v38 = vpop.xlane.xlu1 %1394 }
 0x2bb   : > { %3833 = vst [vmem:[#allocation17_spill] sm:$0xff] %v3415_v61  ;;  %2514 = vpow2.f32 %v1570_v45  ;;  %v1468_v31 = vsub.f32 %v3834_v48, %v1395_v38  ;;  %v1469_v55 = vsub.f32 %v3835_v8, %v1395_v38  ;;  %v1669_v41 = vadd.f32 %v3415_v61, %v3413_v43  ;;  %v3837_v45 = vld [vmem:[#allocation22_spill] sm:$0xff] }
 0x2bc   : > { %2516 = vpow2.f32 %v1572_v52 }
 0x2bd   : > { %v3421_v50 = vpop.eup %2506  ;;  %v1574_v1 = vmul.f32 1.442695, %v1468_v31  ;;  %v1576_v58 = vmul.f32 1.442695, %v1469_v55  ;;  %1670 = vadd.xlane.f32.xlu1 %v1669_v41  ;;  %v3839_v41 = vld [vmem:[#allocation23_spill] sm:$0xff] }
 0x2be   : > { %v3423_v34 = vpop.eup %2508  ;;  %v1398_v57 = vpop.xlane.xlu0 %1397 }
 0x2bf   : > { %2518 = vpow2.f32 %v1574_v1  ;;  %v1470_v39 = vsub.f32 %v3836_v4, %v1398_v57  ;;  %v1471_v40 = vsub.f32 %v3837_v45, %v1398_v57  ;;  %v1672_v38 = vadd.f32 %v3423_v34, %v3421_v50  ;;  %v3840_v1 = vld [vmem:[#allocation24_spill] sm:$0xff] }
 0x2c0   : > { %2520 = vpow2.f32 %v1576_v58 }
 0x2c1   : > { %v3429_v48 = vpop.eup %2510  ;;  %v1578_v52 = vmul.f32 1.442695, %v1470_v39  ;;  %v1580_v8 = vmul.f32 1.442695, %v1471_v40  ;;  %1673 = vadd.xlane.f32.xlu0 %v1672_v38 }
 0x2c2   : > { %3838 = vst [vmem:[#allocation18_spill] sm:$0xff] %v3429_v48  ;;  %v3431_v31 = vpop.eup %2512  ;;  %v1401_v55 = vpop.xlane.xlu1 %1400 }
 0x2c3   : > { %2522 = vpow2.f32 %v1578_v52  ;;  %v1472_v43 = vsub.f32 %v3839_v41, %v1401_v55  ;;  %v1473_v61 = vsub.f32 %v3840_v1, %v1401_v55  ;;  %v1675_v57 = vadd.f32 %v3431_v31, %v3429_v48  ;;  %v3843_v41 = vld [vmem:[#allocation25_spill] sm:$0xff]  ;;  %v3844_v1 = vld [vmem:[#allocation26_spill] sm:$0xff] }
 0x2c4   : > { %2524 = vpow2.f32 %v1580_v8 }
 0x2c5   : > { %v3437_v4 = vpop.eup %2514  ;;  %v1582_v58 = vmul.f32 1.442695, %v1472_v43  ;;  %v1584_v45 = vmul.f32 1.442695, %v1473_v61  ;;  %1676 = vadd.xlane.f32.xlu1 %v1675_v57 }
 0x2c6   : > { %3841 = vst [vmem:[#allocation19_spill] sm:$0xff] %v3437_v4  ;;  %v3439_v39 = vpop.eup %2516 }
 0x2c7   : > { %2526 = vpow2.f32 %v1582_v58  ;;  %v1678_v40 = vadd.f32 %v3439_v39, %v3437_v4 }
 0x2c8   : > { %2528 = vpow2.f32 %v1584_v45 }
 0x2c9   : > { %v3443_v38 = vpop.eup %2518  ;;  %1679 = vadd.xlane.f32.xlu0 %v1678_v40 }
 0x2ca   : > { %3842 = vst [vmem:[#allocation20_spill] sm:$0xff] %v3443_v38  ;;  %v3445_v52 = vpop.eup %2520  ;;  %v1407_v55 = vpop.xlane.xlu1 %1406 }
 0x2cb   : > { %v1476_v8 = vsub.f32 %v3843_v41, %v1407_v55  ;;  %v1477_v48 = vsub.f32 %v3844_v1, %v1407_v55  ;;  %v1681_v43 = vadd.f32 %v3445_v52, %v3443_v38 }
 0x2cd   : > { %v3451_v61 = vpop.eup %2522  ;;  %v1590_v57 = vmul.f32 1.442695, %v1476_v8  ;;  %v1592_v58 = vmul.f32 1.442695, %v1477_v48  ;;  %1682 = vadd.xlane.f32.xlu1 %v1681_v43 }
 0x2ce   : > { %3845 = vst [vmem:[#allocation21_spill] sm:$0xff] %v3451_v61  ;;  %v3453_v4 = vpop.eup %2524 }
 0x2cf   : > { %3846 = vst [vmem:[#allocation22_spill] sm:$0xff] %v3453_v4  ;;  %2530 = vpow2.f32 %v1590_v57  ;;  %v1684_v45 = vadd.f32 %v3453_v4, %v3451_v61 }
 0x2d0   : > { %2532 = vpow2.f32 %v1592_v58 }
 0x2d1   : > { %v3457_v40 = vpop.eup %2526  ;;  %1685 = vadd.xlane.f32.xlu0 %v1684_v45 }
 0x2d2   : > { %3847 = vst [vmem:[#allocation23_spill] sm:$0xff] %v3457_v40  ;;  %v3459_v55 = vpop.eup %2528 }
 0x2d3   : > { %3848 = vst [vmem:[#allocation24_spill] sm:$0xff] %v3459_v55  ;;  %v1687_v41 = vadd.f32 %v3459_v55, %v3457_v40 }
 0x2d5   : > { %1688 = vadd.xlane.f32.xlu1 %v1687_v41 }
 0x2d9   : > { %v3463_v8 = vpop.eup %2530 }
 0x2da   : > { %3849 = vst [vmem:[#allocation25_spill] sm:$0xff] %v3463_v8  ;;  %v3465_v48 = vpop.eup %2532 }
 0x2db   : > { %3850 = vst [vmem:[#allocation26_spill] sm:$0xff] %v3465_v48  ;;  %v1693_v1 = vadd.f32 %v3465_v48, %v3463_v8 }
 0x2dd   : > { %1694 = vadd.xlane.f32.xlu1 %v1693_v1 }
 0x306   : > { %v1620_v43 = vpop.xlane.xlu0 %1619 }
 0x307   : > { %2534 = vrcp.f32 %v1620_v43 }
 0x30a   : > { %v1404_v57 = vpop.xlane.xlu0 %1403  ;;  %v1623_v58 = vpop.xlane.xlu1 %1622 }
 0x30b   : > { %v1474_v45 = vsub.f32 %v3200_v3, %v1404_v57  ;;  %v1475_v61 = vsub.f32 %v3202_v7, %v1404_v57  ;;  %2536 = vrcp.f32 %v1623_v58 }
 0x30d   : > { %v1586_v41 = vmul.f32 1.442695, %v1474_v45  ;;  %v1588_v40 = vmul.f32 1.442695, %v1475_v61 }
 0x30e   : > { %v1626_v55 = vpop.xlane.xlu0 %1625  ;;  %v1413_v4 = vpop.xlane.xlu1 %1412 }
 0x30f   : > { %2538 = vpow2.f32 %v1586_v41  ;;  %v1480_v8 = vsub.f32 %v3218_v10, %v1413_v4  ;;  %v1481_v1 = vsub.f32 %v3220_v22, %v1413_v4 }
 0x310   : > { %2540 = vpow2.f32 %v1588_v40 }
 0x311   : > { %v2535_v43 = vpop.eup %2534  ;;  %2542 = vrcp.f32 %v1626_v55  ;;  %v1598_v48 = vmul.f32 1.442695, %v1480_v8  ;;  %v1600_v3 = vmul.f32 1.442695, %v1481_v1 }
 0x312   : > { %v1410_v38 = vpop.xlane.xlu0 %1409  ;;  %v1629_v7 = vpop.xlane.xlu1 %1628  ;;  %v1716_v57 = vmul.f32 %v2535_v43, %v3258_v42  ;;  %v1715_v61 = vmul.f32 %v2535_v43, %v3256_v19 }
 0x313   : > { %2544 = vpow2.f32 %v1598_v48  ;;  %v1478_v58 = vsub.f32 %v3212_v54, %v1410_v38  ;;  %v1479_v45 = vsub.f32 %v3214_v63, %v1410_v38 }
 0x314   : > { %2546 = vpow2.f32 %v1600_v3  ;;  %1811 = vst [vmem:[%s3480_s28 + $0x8] sm:$0xff] %v1716_v57  ;;  %1810 = vst [vmem:[%s3480_s28] sm:$0xff] %v1715_v61 }
 0x315   : > { %v2537_v22 = vpop.eup %2536  ;;  %v1594_v10 = vmul.f32 1.442695, %v1478_v58  ;;  %v1596_v4 = vmul.f32 1.442695, %v1479_v45  ;;  %2548 = vrcp.f32 %v1629_v7 }
 0x316   : > { %v1632_v42 = vpop.xlane.xlu0 %1631  ;;  %v1419_v19 = vpop.xlane.xlu1 %1418  ;;  %v1719_v40 = vmul.f32 %v2537_v22, %v3266_v24  ;;  %v1718_v54 = vmul.f32 %v2537_v22, %v3264_v25 }
 0x317   : > { %2550 = vpow2.f32 %v1594_v10  ;;  %v1484_v63 = vsub.f32 %v3230_v18, %v1419_v19  ;;  %v1485_v38 = vsub.f32 %v3232_v12, %v1419_v19 }
 0x318   : > { %2552 = vpow2.f32 %v1596_v4  ;;  %1813 = vst [vmem:[%s3480_s28 + $0x18] sm:$0xff] %v1719_v40  ;;  %v2325_v55 = vpack.c.bf16 %v1719_v40, %v1716_v57  ;;  %1812 = vst [vmem:[%s3480_s28 + $0x10] sm:$0xff] %v1718_v54  ;;  %v2327_v8 = vpack.c.bf16 %v1718_v54, %v1715_v61 }
 0x319   : > { %v3490_v48 = vpop.eup %2538  ;;  %2554 = vrcp.f32 %v1632_v42  ;;  %v1606_v41 = vmul.f32 1.442695, %v1484_v63  ;;  %v1608_v1 = vmul.f32 1.442695, %v1485_v38 }
 0x31a   : > { %v3492_v43 = vpop.eup %2540  ;;  %2326 = vmatprep.subr.bf16.mxu0 %v2325_v55  ;;  %v1416_v24 = vpop.xlane.xlu0 %1415 }
 0x31b   : > { %v1635_v25 = vpop.xlane.xlu1 %1634  ;;  %v2543_v3 = vpop.eup %2542  ;;  %2556 = vpow2.f32 %v1606_v41  ;;  %v1482_v12 = vsub.f32 %v3224_v23, %v1416_v24  ;;  %v1483_v18 = vsub.f32 %v3226_v17, %v1416_v24  ;;  %2328 = vmatpush1.bf16.xpose.msra.mxu0 %v2327_v8  ;;  %v1690_v7 = vadd.f32 %v3492_v43, %v3490_v48 }
 0x31c   : > { %2558 = vpow2.f32 %v1608_v1  ;;  %v1722_v57 = vmul.f32 %v2543_v3, %v3277_v51  ;;  %v1721_v61 = vmul.f32 %v2543_v3, %v3272_v29 }
 0x31d   : > { %v3500_v58 = vpop.eup %2544  ;;  %v1602_v45 = vmul.f32 1.442695, %v1482_v12  ;;  %v1604_v22 = vmul.f32 1.442695, %v1483_v18  ;;  %2560 = vrcp.f32 %v1635_v25  ;;  %1691 = vadd.xlane.f32.xlu0 %v1690_v7 }
 0x31e   : > { %v3502_v23 = vpop.eup %2546  ;;  %v1638_v10 = vpop.xlane.xlu0 %1637  ;;  %1815 = vst [vmem:[%s3480_s28 + $0x28] sm:$0xff] %v1722_v57  ;;  %1814 = vst [vmem:[%s3480_s28 + $0x20] sm:$0xff] %v1721_v61 }
 0x31f   : > { %v3504_v17 = vpop.xlane.xlu1 %1424  ;;  %v2549_v4 = vpop.eup %2548  ;;  %2562 = vpow2.f32 %v1602_v45  ;;  %v1699_v29 = vadd.f32 %v3502_v23, %v3500_v58 }
 0x320   : > { %2564 = vpow2.f32 %v1604_v22  ;;  %v1725_v51 = vmul.f32 %v2549_v4, %v3288_v6  ;;  %v1724_v42 = vmul.f32 %v2549_v4, %v3283_v33 }
 0x321   : > { %v3512_v19 = vpop.eup %2550  ;;  %2566 = vrcp.f32 %v1638_v10  ;;  %1700 = vadd.xlane.f32.xlu1 %v1699_v29 }
 0x322   : > { %v3514_v40 = vpop.eup %2552  ;;  %1817 = vst [vmem:[%s3480_s28 + $0x38] sm:$0xff] %v1725_v51  ;;  %v2329_v54 = vpack.c.bf16 %v1725_v51, %v1722_v57  ;;  %v1422_v63 = vpop.xlane.xlu0 %1421  ;;  %1816 = vst [vmem:[%s3480_s28 + $0x30] sm:$0xff] %v1724_v42  ;;  %v2331_v55 = vpack.c.bf16 %v1724_v42, %v1721_v61 }
 0x323   : > { %v1641_v38 = vpop.xlane.xlu1 %1640  ;;  %v2555_v8 = vpop.eup %2554  ;;  %v1486_v41 = vsub.f32 %v3236_v13, %v1422_v63  ;;  %v1487_v6 = vsub.f32 %v3238_v36, %v1422_v63  ;;  %v1696_v33 = vadd.f32 %v3514_v40, %v3512_v19 }
 0x324   : > { %2330 = vmatprep.subr.bf16.mxu0 %v2329_v54  ;;  %v1728_v1 = vmul.f32 %v2555_v8, %v3299_v28  ;;  %v1727_v24 = vmul.f32 %v2555_v8, %v3294_v20  ;;  %2568 = vrcp.f32 %v1641_v38 }
 0x325   : > { %v3524_v25 = vpop.eup %2556  ;;  %v1610_v3 = vmul.f32 1.442695, %v1486_v41  ;;  %v1612_v12 = vmul.f32 1.442695, %v1487_v6  ;;  %2332 = vmatpush1.bf16.xpose.msra.mxu0 %v2331_v55  ;;  %1697 = vadd.xlane.f32.xlu0 %v1696_v33 }
 0x326   : > { %v3526_v18 = vpop.eup %2558  ;;  %v1644_v13 = vpop.xlane.xlu0 %1643  ;;  %1819 = vst [vmem:[%s3480_s28 + $0x48] sm:$0xff] %v1728_v1  ;;  %1818 = vst [vmem:[%s3480_s28 + $0x40] sm:$0xff] %v1727_v24 }
 0x327   : > { %v2561_v36 = vpop.eup %2560  ;;  %2570 = vpow2.f32 %v1610_v3  ;;  %v1705_v28 = vadd.f32 %v3526_v18, %v3524_v25 }
 0x328   : > { %2572 = vpow2.f32 %v1612_v12  ;;  %v1731_v20 = vmul.f32 %v2561_v36, %v3310_v16  ;;  %v1730_v7 = vmul.f32 %v2561_v36, %v3305_v14  ;;  %v852_v12 = vld [vmem:[%s3764_s7 + $0x8] sm:$0xff] }
 0x329   : > { %v3534_v57 = vpop.eup %2562  ;;  %2574 = vrcp.f32 %v1644_v13  ;;  %1706 = vadd.xlane.f32.xlu1 %v1705_v28 }
 0x32a   : > { %v3536_v61 = vpop.eup %2564  ;;  %1821 = vst [vmem:[%s3480_s28 + $0x58] sm:$0xff] %v1731_v20  ;;  %v2333_v45 = vpack.c.bf16 %v1731_v20, %v1728_v1  ;;  %v1647_v22 = vpop.xlane.xlu1 %1646  ;;  %1820 = vst [vmem:[%s3480_s28 + $0x50] sm:$0xff] %v1730_v7  ;;  %v2335_v10 = vpack.c.bf16 %v1730_v7, %v1727_v24 }
 0x32b   : > { %v2567_v4 = vpop.eup %2566  ;;  %2576 = vrcp.f32 %v1647_v22  ;;  %v1702_v16 = vadd.f32 %v3536_v61, %v3534_v57 }
 0x32c   : > { %2334 = vmatprep.subr.bf16.mxu0 %v2333_v45  ;;  %v1734_v14 = vmul.f32 %v2567_v4, %v3321_v26  ;;  %v1733_v29 = vmul.f32 %v2567_v4, %v3316_v21 }
 0x32d   : > { %2336 = vmatpush1.bf16.xpose.msra.mxu0 %v2335_v10  ;;  %1703 = vadd.xlane.f32.xlu0 %v1702_v16 }
 0x32e   : > { %v1650_v51 = vpop.xlane.xlu0 %1649  ;;  %1823 = vst [vmem:[%s3480_s28 + $0x68] sm:$0xff] %v1734_v14  ;;  %1822 = vst [vmem:[%s3480_s28 + $0x60] sm:$0xff] %v1733_v29  ;;  %v2569_v42 = vpop.eup %2568 }
 0x32f   : > { %2578 = vrcp.f32 %v1650_v51  ;;  %v1737_v54 = vmul.f32 %v2569_v42, %v3332_v11  ;;  %v1736_v63 = vmul.f32 %v2569_v42, %v3327_v0 }
 0x331   : > { %v3548_v38 = vpop.eup %2570  ;;  %1825 = vst [vmem:[%s3480_s28 + $0x78] sm:$0xff] %v1737_v54  ;;  %v2337_v26 = vpack.c.bf16 %v1737_v54, %v1734_v14  ;;  %1824 = vst [vmem:[%s3480_s28 + $0x70] sm:$0xff] %v1736_v63  ;;  %v2339_v21 = vpack.c.bf16 %v1736_v63, %v1733_v29  ;;  %v1489_v14 = vsub.f32 %v3244_v60, %v3504_v17 }
 0x332   : > { %v3550_v55 = vpop.eup %2572  ;;  %v1653_v8 = vpop.xlane.xlu1 %1652 }
 0x333   : > { %v2575_v41 = vpop.eup %2574  ;;  %2580 = vrcp.f32 %v1653_v8  ;;  %v1708_v6 = vadd.f32 %v3550_v55, %v3548_v38  ;;  %2338 = vmatprep.subr.bf16.mxu0 %v2337_v26  ;;  %v1616_v26 = vmul.f32 1.442695, %v1489_v14 }
 0x334   : > { %v1740_v0 = vmul.f32 %v2575_v41, %v3343_v30  ;;  %v1739_v11 = vmul.f32 %v2575_v41, %v3338_v32 }
 0x335   : > { %v2577_v33 = vpop.eup %2576  ;;  %2340 = vmatpush1.bf16.xpose.msra.mxu0 %v2339_v21  ;;  %1709 = vadd.xlane.f32.xlu0 %v1708_v6 }
 0x336   : > { %v1656_v1 = vpop.xlane.xlu0 %1655  ;;  %v1743_v24 = vmul.f32 %v2577_v33, %v3351_v44  ;;  %1827 = vst [vmem:[%s3480_s28 + $0x88] sm:$0xff] %v1740_v0  ;;  %v1742_v3 = vmul.f32 %v2577_v33, %v3349_v35  ;;  %1826 = vst [vmem:[%s3480_s28 + $0x80] sm:$0xff] %v1739_v11  ;;  %v3851_v33 = vld [vmem:[#allocation15_spill] sm:$0xff] }
 0x337   : > { %2582 = vrcp.f32 %v1656_v1 }
 0x338   : > { %1829 = vst [vmem:[%s3480_s28 + $0x98] sm:$0xff] %v1743_v24  ;;  %v2341_v30 = vpack.c.bf16 %v1743_v24, %v1740_v0  ;;  %1828 = vst [vmem:[%s3480_s28 + $0x90] sm:$0xff] %v1742_v3  ;;  %v2343_v13 = vpack.c.bf16 %v1742_v3, %v1739_v11  ;;  %v3852_v24 = vld [vmem:[#allocation14_spill] sm:$0xff] }
 0x339   : > { %v2579_v32 = vpop.eup %2578 }
 0x33a   : > { %862 = vperm.xlu1 %2433, %v852_v12   ;;  %2342 = vmatprep.subr.bf16.mxu0 %v2341_v30  ;;  %v1659_v44 = vpop.xlane.xlu1 %1658  ;;  %v1746_v36 = vmul.f32 %v2579_v32, %v3359_v46  ;;  %v1745_v35 = vmul.f32 %v2579_v32, %v3357_v53  ;;  %v3853_v12 = vld [vmem:[#allocation17_spill] sm:$0xff]  ;;  %v3854_v32 = vld [vmem:[#allocation16_spill] sm:$0xff] }
 0x33b   : > { %2584 = vrcp.f32 %v1659_v44 }
 0x33c   : > { %1831 = vst [vmem:[%s3480_s28 + $0xa8] sm:$0xff] %v1746_v36  ;;  %1830 = vst [vmem:[%s3480_s28 + $0xa0] sm:$0xff] %v1745_v35 }
 0x33d   : > { %v2581_v28 = vpop.eup %2580  ;;  %2344 = vmatpush1.bf16.xpose.msra.mxu0 %v2343_v13 }
 0x33e   : > { %v1662_v20 = vpop.xlane.xlu0 %1661  ;;  %v1749_v7 = vmul.f32 %v2581_v28, %v3367_v9  ;;  %v1748_v45 = vmul.f32 %v2581_v28, %v3365_v56  ;;  %v1488_v56 = vsub.f32 %v3242_v27, %v3504_v17  ;;  %v854_v17 = vld [vmem:[%s3764_s7 + $0x18] sm:$0xff] }
 0x33f   : > { %2586 = vrcp.f32 %v1662_v20 }
 0x340   : > { %1833 = vst [vmem:[%s3480_s28 + $0xb8] sm:$0xff] %v1749_v7  ;;  %v2345_v22 = vpack.c.bf16 %v1749_v7, %v1746_v36  ;;  %1832 = vst [vmem:[%s3480_s28 + $0xb0] sm:$0xff] %v1748_v45  ;;  %v2347_v46 = vpack.c.bf16 %v1748_v45, %v1745_v35  ;;  %v1614_v54 = vmul.f32 1.442695, %v1488_v56 }
 0x341   : > { %v2583_v10 = vpop.eup %2582 }
 0x342   : > { %2346 = vmatprep.subr.bf16.mxu0 %v2345_v22  ;;  %v1665_v53 = vpop.xlane.xlu1 %1664  ;;  %v1752_v4 = vmul.f32 %v2583_v10, %v3375_v15  ;;  %v1751_v16 = vmul.f32 %v2583_v10, %v3373_v59  ;;  %v851_v59 = vld [vmem:[%s3764_s7] sm:$0xff] }
 0x343   : > { %2588 = vrcp.f32 %v1665_v53 }
 0x344   : > { %1835 = vst [vmem:[%s3480_s28 + $0xc8] sm:$0xff] %v1752_v4  ;;  %1834 = vst [vmem:[%s3480_s28 + $0xc0] sm:$0xff] %v1751_v16 }
 0x345   : > { %v2585_v9 = vpop.eup %2584  ;;  %2348 = vmatpush1.bf16.xpose.msra.mxu0 %v2347_v46 }
 0x346   : > { %v1668_v29 = vpop.xlane.xlu0 %1667  ;;  %v1755_v51 = vmul.f32 %v2585_v9, %v3383_v47  ;;  %v1754_v42 = vmul.f32 %v2585_v9, %v3381_v62 }
 0x347   : > { %2590 = vrcp.f32 %v1668_v29 }
 0x348   : > { %1837 = vst [vmem:[%s3480_s28 + $0xd8] sm:$0xff] %v1755_v51  ;;  %v2349_v15 = vpack.c.bf16 %v1755_v51, %v1752_v4  ;;  %1836 = vst [vmem:[%s3480_s28 + $0xd0] sm:$0xff] %v1754_v42  ;;  %v2351_v63 = vpack.c.bf16 %v1754_v42, %v1751_v16  ;;  %v3855_v16 = vld [vmem:[#allocation18_spill] sm:$0xff]  ;;  %v3856_v51 = vld [vmem:[#allocation19_spill] sm:$0xff] }
 0x349   : > { %v2587_v27 = vpop.eup %2586 }
 0x34a   : > { %2350 = vmatprep.subr.bf16.mxu0 %v2349_v15  ;;  %v1671_v60 = vpop.xlane.xlu1 %1670  ;;  %v1758_v47 = vmul.f32 %v2587_v27, %v3391_v49  ;;  %v1757_v62 = vmul.f32 %v2587_v27, %v3389_v2  ;;  %v3857_v15 = vld [vmem:[#allocation20_spill] sm:$0xff] }
 0x34b   : > { %857 = vperm.xlu0 %2432, %v851_v59   ;;  %2592 = vrcp.f32 %v1671_v60  ;;  %v3858_v60 = vld [vmem:[#allocation22_spill] sm:$0xff] }
 0x34c   : > { %1839 = vst [vmem:[%s3480_s28 + $0xe8] sm:$0xff] %v1758_v47  ;;  %1838 = vst [vmem:[%s3480_s28 + $0xe0] sm:$0xff] %v1757_v62  ;;  %2594 = vpow2.f32 %v1614_v54 }
 0x34d   : > { %v2589_v8 = vpop.eup %2588  ;;  %2352 = vmatpush1.bf16.xpose.msra.mxu0 %v2351_v63  ;;  %2596 = vpow2.f32 %v1616_v26 }
 0x34e   : > { %v1674_v21 = vpop.xlane.xlu0 %1673  ;;  %v1761_v49 = vmul.f32 %v2589_v8, %v3399_v37  ;;  %v1760_v2 = vmul.f32 %v2589_v8, %v3397_v5 }
 0x34f   : > { %872 = vperm.xlu0 %2432, %v854_v17   ;;  %2598 = vrcp.f32 %v1674_v21  ;;  %v3860_v21 = vld [vmem:[#allocation24_spill] sm:$0xff] }
 0x350   : > { %1841 = vst [vmem:[%s3480_s28 + $0xf8] sm:$0xff] %v1761_v49  ;;  %v2353_v41 = vpack.c.bf16 %v1761_v49, %v1758_v47  ;;  %1840 = vst [vmem:[%s3480_s28 + $0xf0] sm:$0xff] %v1760_v2  ;;  %v2355_v0 = vpack.c.bf16 %v1760_v2, %v1757_v62  ;;  %v3859_v62 = vld [vmem:[#allocation21_spill] sm:$0xff]  ;;  %v3861_v2 = vld [vmem:[#allocation23_spill] sm:$0xff] }
 0x351   : > { %v2591_v6 = vpop.eup %2590 }
 0x352   : > { %2354 = vmatprep.subr.bf16.mxu0 %v2353_v41  ;;  %v1677_v11 = vpop.xlane.xlu1 %1676  ;;  %v1764_v1 = vmul.f32 %v2591_v6, %v3851_v33  ;;  %v1763_v3 = vmul.f32 %v2591_v6, %v3852_v24  ;;  %v2199_v6 = vld [vmem:[#allocation2] ss:$0 sm:$0xff] }
 0x353   : > { %2600 = vrcp.f32 %v1677_v11 }
 0x354   : > { %1843 = vst [vmem:[%s3480_s28 + $0x108] sm:$0xff] %v1764_v1  ;;  %1842 = vst [vmem:[%s3480_s28 + $0x100] sm:$0xff] %v1763_v3 }
 0x355   : > { %v2593_v37 = vpop.eup %2592  ;;  %2356 = vmatpush1.bf16.xpose.msra.mxu0 %v2355_v0 }
 0x356   : > { %v1680_v5 = vpop.xlane.xlu0 %1679  ;;  %v1767_v30 = vmul.f32 %v2593_v37, %v3853_v12  ;;  %v1766_v13 = vmul.f32 %v2593_v37, %v3854_v32  ;;  %v3607_v44 = vpop.eup %2594 }
 0x357   : > { %2602 = vrcp.f32 %v1680_v5  ;;  %v3609_v36 = vpop.eup %2596 }
 0x358   : > { %1845 = vst [vmem:[%s3480_s28 + $0x118] sm:$0xff] %v1767_v30  ;;  %v2357_v35 = vpack.c.bf16 %v1767_v30, %v1764_v1  ;;  %1844 = vst [vmem:[%s3480_s28 + $0x110] sm:$0xff] %v1766_v13  ;;  %v2359_v20 = vpack.c.bf16 %v1766_v13, %v1763_v3  ;;  %v1711_v10 = vadd.f32 %v3609_v36, %v3607_v44  ;;  %v3862_v1 = vld [vmem:[#allocation26_spill] sm:$0xff]  ;;  %v3863_v3 = vld [vmem:[#allocation25_spill] sm:$0xff] }
 0x359   : > { %v2599_v28 = vpop.eup %2598 }
 0x35a   : > { %2358 = vmatprep.subr.bf16.mxu0 %v2357_v35  ;;  %v1683_v7 = vpop.xlane.xlu1 %1682  ;;  %v1770_v45 = vmul.f32 %v2599_v28, %v3423_v34  ;;  %v1769_v22 = vmul.f32 %v2599_v28, %v3421_v50 }
 0x35b   : > { %2604 = vrcp.f32 %v1683_v7 }
 0x35c   : > { %1847 = vst [vmem:[%s3480_s28 + $0x128] sm:$0xff] %v1770_v45  ;;  %1846 = vst [vmem:[%s3480_s28 + $0x120] sm:$0xff] %v1769_v22 }
 0x35d   : > { %v2601_v46 = vpop.eup %2600  ;;  %2360 = vmatpush1.bf16.xpose.msra.mxu0 %v2359_v20 }
 0x35e   : > { %1712 = vadd.xlane.f32.xlu1 %v1711_v10  ;;  %v1686_v53 = vpop.xlane.xlu0 %1685  ;;  %v1773_v4 = vmul.f32 %v2601_v46, %v3431_v31  ;;  %v1772_v9 = vmul.f32 %v2601_v46, %v3855_v16 }
 0x35f   : > { %2606 = vrcp.f32 %v1686_v53 }
 0x360   : > { %1849 = vst [vmem:[%s3480_s28 + $0x138] sm:$0xff] %v1773_v4  ;;  %v2361_v50 = vpack.c.bf16 %v1773_v4, %v1770_v45  ;;  %1848 = vst [vmem:[%s3480_s28 + $0x130] sm:$0xff] %v1772_v9  ;;  %v2363_v56 = vpack.c.bf16 %v1772_v9, %v1769_v22 }
 0x361   : > { %v2603_v34 = vpop.eup %2602 }
 0x362   : > { %2362 = vmatprep.subr.bf16.mxu0 %v2361_v50  ;;  %v1689_v14 = vpop.xlane.xlu1 %1688  ;;  %v1776_v29 = vmul.f32 %v2603_v34, %v3439_v39  ;;  %v1775_v42 = vmul.f32 %v2603_v34, %v3856_v51 }
 0x363   : > { %2608 = vrcp.f32 %v1689_v14 }
 0x364   : > { %1851 = vst [vmem:[%s3480_s28 + $0x148] sm:$0xff] %v1776_v29  ;;  %1850 = vst [vmem:[%s3480_s28 + $0x140] sm:$0xff] %v1775_v42 }
 0x365   : > { %v2605_v31 = vpop.eup %2604  ;;  %2364 = vmatpush1.bf16.xpose.msra.mxu0 %v2363_v56 }
 0x366   : > { %v1779_v59 = vmul.f32 %v2605_v31, %v3445_v52  ;;  %v1778_v27 = vmul.f32 %v2605_v31, %v3857_v15  ;;  %v853_v52 = vld [vmem:[%s3764_s7 + $0x10] sm:$0xff] }
 0x368   : > { %1853 = vst [vmem:[%s3480_s28 + $0x158] sm:$0xff] %v1779_v59  ;;  %v2365_v54 = vpack.c.bf16 %v1779_v59, %v1776_v29  ;;  %1852 = vst [vmem:[%s3480_s28 + $0x150] sm:$0xff] %v1778_v27  ;;  %v2367_v26 = vpack.c.bf16 %v1778_v27, %v1775_v42 }
 0x369   : > { %v2607_v63 = vpop.eup %2606 }
 0x36a   : > { %2366 = vmatprep.subr.bf16.mxu0 %v2365_v54  ;;  %v1695_v39 = vpop.xlane.xlu1 %1694  ;;  %v1782_v47 = vmul.f32 %v2607_v63, %v3858_v60  ;;  %v1781_v17 = vmul.f32 %v2607_v63, %v3859_v62  ;;  %v3868_v62 = vld [vmem:[#allocation11_spill] sm:$0xff] }
 0x36b   : > { %2610 = vrcp.f32 %v1695_v39  ;;  %v3866_v39 = vld [vmem:[#allocation9_spill] sm:$0xff] }
 0x36c   : > { %1855 = vst [vmem:[%s3480_s28 + $0x168] sm:$0xff] %v1782_v47  ;;  %1854 = vst [vmem:[%s3480_s28 + $0x160] sm:$0xff] %v1781_v17 }
 0x36d   : > { %v2609_v8 = vpop.eup %2608  ;;  %2368 = vmatpush1.bf16.xpose.msra.mxu0 %v2367_v26  ;;  %v3865_v26 = vld [vmem:[#allocation6_spill] sm:$0xff] }
 0x36e   : > { %v1785_v49 = vmul.f32 %v2609_v8, %v3860_v21  ;;  %v1784_v41 = vmul.f32 %v2609_v8, %v3861_v2  ;;  %v3870_v21 = vld [vmem:[#allocation13_spill] sm:$0xff]  ;;  %v3871_v2 = vld [vmem:[#allocation12_spill] sm:$0xff] }
 0x36f   : > { %867 = vperm.xlu1 %2433, %v853_v52   ;;  %v3869_v52 = vld [vmem:[#allocation10_spill] sm:$0xff] }
 0x370   : > { %1857 = vst [vmem:[%s3480_s28 + $0x178] sm:$0xff] %v1785_v49  ;;  %v2369_v0 = vpack.c.bf16 %v1785_v49, %v1782_v47  ;;  %1856 = vst [vmem:[%s3480_s28 + $0x170] sm:$0xff] %v1784_v41  ;;  %v2371_v11 = vpack.c.bf16 %v1784_v41, %v1781_v17  ;;  %v3867_v47 = vld [vmem:[#allocation8_spill] sm:$0xff] }
 0x372   : > { %2370 = vmatprep.subr.bf16.mxu0 %v2369_v0 }
 0x373   : > { %1970 = vperm.xlu1 %2433, %v2199_v6  }
 0x375   : > { %v2611_v33 = vpop.eup %2610  ;;  %2372 = vmatpush1.bf16.xpose.msra.mxu0 %v2371_v11 }
 0x376   : > { %v1791_v24 = vmul.f32 %v2611_v33, %v3862_v1  ;;  %v1790_v37 = vmul.f32 %v2611_v33, %v3863_v3 }
 0x378   : > { %1861 = vst [vmem:[%s3480_s28 + $0x198] sm:$0xff] %v1791_v24  ;;  %1860 = vst [vmem:[%s3480_s28 + $0x190] sm:$0xff] %v1790_v37 }
 0x3aa   : > { %v1692_v5 = vpop.xlane.xlu0 %1691 }
 0x3ab   : > { %2612 = vrcp.f32 %v1692_v5 }
 0x3ae   : > { %v1701_v12 = vpop.xlane.xlu1 %1700 }
 0x3af   : > { %2614 = vrcp.f32 %v1701_v12 }
 0x3b2   : > { %v1698_v30 = vpop.xlane.xlu0 %1697 }
 0x3b3   : > { %2616 = vrcp.f32 %v1698_v30 }
 0x3b5   : > { %v2613_v32 = vpop.eup %2612 }
 0x3b6   : > { %v1707_v13 = vpop.xlane.xlu1 %1706  ;;  %v1788_v35 = vmul.f32 %v2613_v32, %v3492_v43  ;;  %v1787_v28 = vmul.f32 %v2613_v32, %v3490_v48 }
 0x3b7   : > { %2618 = vrcp.f32 %v1707_v13 }
 0x3b8   : > { %1859 = vst [vmem:[%s3480_s28 + $0x188] sm:$0xff] %v1788_v35  ;;  %v2373_v20 = vpack.c.bf16 %v1791_v24, %v1788_v35  ;;  %1858 = vst [vmem:[%s3480_s28 + $0x180] sm:$0xff] %v1787_v28  ;;  %v2375_v7 = vpack.c.bf16 %v1790_v37, %v1787_v28 }
 0x3b9   : > { %v2615_v45 = vpop.eup %2614 }
 0x3ba   : > { %v1704_v22 = vpop.xlane.xlu0 %1703  ;;  %2374 = vmatprep.subr.bf16.mxu0 %v2373_v20  ;;  %v1797_v10 = vmul.f32 %v2615_v45, %v3502_v23  ;;  %v1796_v46 = vmul.f32 %v2615_v45, %v3500_v58 }
 0x3bb   : > { %2620 = vrcp.f32 %v1704_v22  ;;  %2376 = vmatpush1.bf16.xpose.msra.mxu0 %v2375_v7 }
 0x3bc   : > { %1865 = vst [vmem:[%s3480_s28 + $0x1b8] sm:$0xff] %v1797_v10  ;;  %1864 = vst [vmem:[%s3480_s28 + $0x1b0] sm:$0xff] %v1796_v46 }
 0x3bd   : > { %v2617_v48 = vpop.eup %2616 }
 0x3be   : > { %v1794_v43 = vmul.f32 %v2617_v48, %v3514_v40  ;;  %v1793_v53 = vmul.f32 %v2617_v48, %v3512_v19 }
 0x3c0   : > { %1863 = vst [vmem:[%s3480_s28 + $0x1a8] sm:$0xff] %v1794_v43  ;;  %v2377_v4 = vpack.c.bf16 %v1797_v10, %v1794_v43  ;;  %1862 = vst [vmem:[%s3480_s28 + $0x1a0] sm:$0xff] %v1793_v53  ;;  %v2379_v16 = vpack.c.bf16 %v1796_v46, %v1793_v53 }
 0x3c1   : > { %v2619_v23 = vpop.eup %2618 }
 0x3c2   : > { %v1710_v9 = vpop.xlane.xlu0 %1709  ;;  %2378 = vmatprep.subr.bf16.mxu0 %v2377_v4  ;;  %v1803_v58 = vmul.f32 %v2619_v23, %v3526_v18  ;;  %v1802_v50 = vmul.f32 %v2619_v23, %v3524_v25  ;;  %v3864_v18 = vld [vmem:[#allocation7_spill] sm:$0xff] }
 0x3c3   : > { %2622 = vrcp.f32 %v1710_v9  ;;  %2380 = vmatpush1.bf16.xpose.msra.mxu0 %v2379_v16 }
 0x3c4   : > { %1869 = vst [vmem:[%s3480_s28 + $0x1d8] sm:$0xff] %v1803_v58  ;;  %1868 = vst [vmem:[%s3480_s28 + $0x1d0] sm:$0xff] %v1802_v50 }
 0x3c5   : > { %v2621_v40 = vpop.eup %2620 }
 0x3c6   : > { %v1800_v19 = vmul.f32 %v2621_v40, %v3536_v61  ;;  %v1799_v34 = vmul.f32 %v2621_v40, %v3534_v57  ;;  %v863_v57 = vpop.permute.xlu1 %862 }
 0x3c8   : > { %1867 = vst [vmem:[%s3480_s28 + $0x1c8] sm:$0xff] %v1800_v19  ;;  %v2381_v56 = vpack.c.bf16 %v1803_v58, %v1800_v19  ;;  %1866 = vst [vmem:[%s3480_s28 + $0x1c0] sm:$0xff] %v1799_v34  ;;  %v2383_v14 = vpack.c.bf16 %v1802_v50, %v1799_v34 }
 0x3ca   : > { %v858_v29 = vpop.permute.xlu0 %857  ;;  %2382 = vmatprep.subr.bf16.mxu0 %v2381_v56 }
 0x3cb   : > { %v956_v25 = vadd.f32 %v3864_v18, %v858_v29  ;;  %2384 = vmatpush1.bf16.xpose.msra.mxu0 %v2383_v14 }
 0x3cd   : > { %v2623_v51 = vpop.eup %2622  ;;  %1938 = vmatprep.mubr.f32.mxu0 %v956_v25 }
 0x3ce   : > { %v1806_v42 = vmul.f32 %v2623_v51, %v3550_v55  ;;  %v1805_v31 = vmul.f32 %v2623_v51, %v3548_v38  ;;  %v954_v55 = vadd.f32 %v3865_v26, %v858_v29  ;;  %v962_v38 = vadd.f32 %v3866_v39, %v863_v57  ;;  %v873_v17 = vpop.permute.xlu0 %872 }
 0x3cf   : > { %v974_v49 = vadd.f32 %v3870_v21, %v873_v17  ;;  %v972_v41 = vadd.f32 %v3871_v2, %v873_v17 }
 0x3d0   : > { %1871 = vst [vmem:[%s3480_s28 + $0x1e8] sm:$0xff] %v1806_v42  ;;  %1870 = vst [vmem:[%s3480_s28 + $0x1e0] sm:$0xff] %v1805_v31 }
 0x3eb   : > { %v1713_v61 = vpop.xlane.xlu1 %1712 }
 0x3ec   : > { %2624 = vrcp.f32 %v1713_v61 }
 0x3ef   : > { %v868_v60 = vpop.permute.xlu1 %867 }
 0x3f0   : > { %v966_v8 = vadd.f32 %v3869_v52, %v868_v60 }
 0x3f6   : > { %v2625_v59 = vpop.eup %2624 }
 0x3f7   : > { %v1809_v15 = vmul.f32 %v2625_v59, %v3609_v36  ;;  %v1808_v27 = vmul.f32 %v2625_v59, %v3607_v44  ;;  %v960_v36 = vadd.f32 %v3867_v47, %v863_v57  ;;  %v968_v44 = vadd.f32 %v3868_v62, %v868_v60 }
 0x3f9   : > { %1873 = vst [vmem:[%s3480_s28 + $0x1f8] sm:$0xff] %v1809_v15  ;;  %v2385_v54 = vpack.c.bf16 %v1809_v15, %v1806_v42  ;;  %1872 = vst [vmem:[%s3480_s28 + $0x1f0] sm:$0xff] %v1808_v27  ;;  %v2387_v63 = vpack.c.bf16 %v1808_v27, %v1805_v31  ;;  %s2638_s28 = sshll.u32 %s2700_s8, 4  ;;  %s2639_s28 = int_to_ptr.vmem [resolvable:$false] %s2638_s28 }
 0x3fa   : > { %s2640_s22 = scalar_lea.vmem %s2639_s28, 16384  ;;  %p2641_p0 = scmp.lt.s32.totalorder %s3689_s13, %s2639_s28 }
 0x3fb   : > { %2386 = vmatprep.subr.bf16.mxu0 %v2385_v54  ;;  %p2642_p1 = scmp.lt.s32.totalorder %s2640_s22, %s2634_s30 }
 0x3fc   : > { %2388 = vmatpush1.bf16.xpose.msra.mxu0 %v2387_v63 }
 0x3fd   : > { %p2643_p2 = por %p2642_p1, %p2641_p0 }
 0x3ff   : > { %p2644_p3 = pnand %p2643_p2, %p2637_p13 }
 0x403   : > { %1939 = vmatmul.mubr.f32.vlgmr.msra.gmra.mrb[32].mxu0 %v954_v55 }
 0x404   : > { %1944 = vmatprep.mubr.f32.mxu0 %v962_v38 }
 0x407   : > { %1945 = vmatmul.mubr.f32.gmra.mrb[34].mxu0 %v960_v36 }
 0x408   : > { %1950 = vmatprep.mubr.f32.mxu0 %v968_v44 }
 0x40b   : > { %1951 = vmatmul.mubr.f32.gmra.mrb[36].mxu0 %v966_v8 }
 0x40c   : > { %1956 = vmatprep.mubr.f32.mxu0 %v974_v49 }
 0x40f   : > { %1957 = vmatmul.mubr.f32.gmra.mrb[38].mxu0 %v972_v41 }
 0x410   : > { %2647 = shalt.err (!%p2644_p3)
}
 0x411   : > { %s2648_s12 = scalar_lea.hbm %s3687_s26, 8192  ;;  %s2652_s19 = scalar_lea.hbm %s3767_s10, 16384 }
 0x412   : > { %p2649_p4 = scmp.ne.s32.totalorder %s3687_s26, %s2648_s12  ;;  %p2653_p9 = scmp.lt.u32.totalorder %s3687_s26, %s3767_s10 }
 0x413   : > { %p2654_p10 = scmp.lt.u32.totalorder %s2652_s19, %s2648_s12  ;;  %p2656_p12 = scmp.lt.u32.totalorder %s2648_s12, %s3687_s26 }
 0x414   : > { %p2650_p7 = pnand %p2649_p4, %p2799_p5 }
 0x415   : > { %p2655_p11 = por %p2654_p10, %p2653_p9 }
 0x416   : > { %p2651_p8 = pneg %p2650_p7 }
 0x417   : > { %p2657_p13 = por %p2656_p12, %p2655_p11 }
 0x419   : > { %p2658_p0 = pnand %p2657_p13, %p2651_p8 }
 0x41b   : > { %2661 = shalt.err (!%p2658_p0)
}
 0x41c   : > { %s2701_s22 = smov 256   ;;  %s2702_s30 = smov 16   ;;  %v1971_v6 = vpop.permute.xlu1 %1970  ;;  %v2626_v24 = vld [vmem:[%s2836_s29] sm:$0xff]  ;;  %v2627_v37 = vld [vmem:[%s2836_s29 + $0x8] sm:$0xff]  ;;  %v2628_v35 = vld [vmem:[%s2836_s29 + $0x10] sm:$0xff] }
 0x41d   : > { %2389 = dma.vmem_to_hbm [thread:$0]  (%p2799_p5), %s3689_s13, 8192, %s3687_s26, %s3693_s27, %s2701_s22, %s2701_s22, %s2702_s30  }
 0x41e   : > { %s3872_s12 = sshll.u32 %s2827_s21, 6  ;;  %v2629_v20 = vld [vmem:[%s2836_s29 + $0x18] sm:$0xff]  ;;  %v2630_v48 = vld [vmem:[%s2836_s29 + $0x20] sm:$0xff]  ;;  %v2631_v53 = vld [vmem:[%s2836_s29 + $0x28] sm:$0xff] }
 0x41f   : > { %s3722_s19 = scalar_lea.vmem %s3766_s9, %s3872_s12  ;;  %v2632_v50 = vld [vmem:[%s2836_s29 + $0x30] sm:$0xff]  ;;  %v2633_v19 = vld [vmem:[%s2836_s29 + $0x38] sm:$0xff] }
 0x4d6   : > { %v1940_v0 = vpop.f32.mrb[32].mxu0 }
 0x4d7   : > { %v1973_v11 = vmul.f32 %v1971_v6, %v1940_v0  ;;  %v1942_v33 = vpop.f32.mrb[33].mxu0 }
 0x4d8   : > { %v1974_v1 = vmul.f32 %v1971_v6, %v1942_v33 }
 0x4d9   : > { %v1981_v3 = vadd.f32 %v2626_v24, %v1973_v11 }
 0x4da   : > { %v1982_v5 = vadd.f32 %v2627_v37, %v1974_v1  ;;  %v1946_v12 = vpop.f32.mrb[34].mxu0 }
 0x4db   : > { %1989 = vst [vmem:[%s3722_s19] sm:$0xff] %v1981_v3  ;;  %v1975_v30 = vmul.f32 %v1971_v6, %v1946_v12  ;;  %v1948_v32 = vpop.f32.mrb[35].mxu0 }
 0x4dc   : > { %1990 = vst [vmem:[%s3722_s19 + $0x8] sm:$0xff] %v1982_v5  ;;  %v1976_v13 = vmul.f32 %v1971_v6, %v1948_v32 }
 0x4dd   : > { %v1983_v28 = vadd.f32 %v2628_v35, %v1975_v30 }
 0x4de   : > { %v1984_v7 = vadd.f32 %v2629_v20, %v1976_v13  ;;  %v1952_v45 = vpop.f32.mrb[36].mxu0 }
 0x4df   : > { %1991 = vst [vmem:[%s3722_s19 + $0x10] sm:$0xff] %v1983_v28  ;;  %v1977_v22 = vmul.f32 %v1971_v6, %v1952_v45  ;;  %v1954_v10 = vpop.f32.mrb[37].mxu0 }
 0x4e0   : > { %1992 = vst [vmem:[%s3722_s19 + $0x18] sm:$0xff] %v1984_v7  ;;  %v1978_v46 = vmul.f32 %v1971_v6, %v1954_v10 }
 0x4e1   : > { %v1985_v43 = vadd.f32 %v2630_v48, %v1977_v22 }
 0x4e2   : > { %v1986_v4 = vadd.f32 %v2631_v53, %v1978_v46  ;;  %v1958_v16 = vpop.f32.mrb[38].mxu0 }
 0x4e3   : > { %1993 = vst [vmem:[%s3722_s19 + $0x20] sm:$0xff] %v1985_v43  ;;  %v1979_v23 = vmul.f32 %v1971_v6, %v1958_v16  ;;  %v1960_v9 = vpop.f32.mrb[39].mxu0 }
 0x4e4   : > { %1994 = vst [vmem:[%s3722_s19 + $0x28] sm:$0xff] %v1986_v4  ;;  %v1980_v58 = vmul.f32 %v1971_v6, %v1960_v9 }
 0x4e5   : > { %v1987_v40 = vadd.f32 %v2632_v50, %v1979_v23 }
 0x4e6   : > { %v1988_v34 = vadd.f32 %v2633_v19, %v1980_v58 }
 0x4e7   : > { %1995 = vst [vmem:[%s3722_s19 + $0x30] sm:$0xff] %v1987_v40 }
 0x4e8   : > { %1996 = vst [vmem:[%s3722_s19 + $0x38] sm:$0xff] %v1988_v34 }
 0x4e9 PF: > { %p2395_p5 = scmp.ge.s32.totalorder %s2696_s18, 2  ;;  %s2042_s24 = sand.u32 1, %s2684_s15  }
 0x4ea   : > { %s2043_s21 = scalar_lea.sflag [#allocation4], %s2042_s24 }
 0x4eb   : > { %p2392_p1 = pnand %p2395_p5, %p2803_p6 }
 0x4ed   : > { %2679 = dma.done.wait (!%p2392_p1), %s2043_s21, 8192  }
 0x4ee   : > { %2681 = vsyncadd (!%p2392_p1), %s2043_s21, 4294959104  ;;  %p23_p2 = scmp.ge.s32.totalorder %s2786_s20, 4   ;;  %s3873_s15 = smov %s2688_s16 }
 0x4ef   : > { %s3874_s16 = smov %s2692_s17  ;;  %s3875_s17 = smov %s2797_s23 }
 0x4f0   : > { %s3876_s18 = smov %s2786_s20  ;;  %25 = sbr.rel (!%p23_p2) target bundleno = 6 (0x6), region = 106 }
 0x4f7   :  { %2048 = vsyncpa [#allocation4], 1 }
 0x4f8   :  { %2050 = vsyncpa [#allocation4 + $0x1], 1 }

</bundles_post_ra>
